<compile_context>
chip_gen: v7x
topology: tpu7x:2x2x1
jax: 0.10.0
libtpu: 0.0.40
codegen_flags: <defaults>
</compile_context>

<pallas_src>
import functools

import jax
import jax.numpy as jnp
from jax.experimental import pallas as pl
from jax.experimental.pallas import tpu as pltpu


def _round_up(x, m):
    return ((x + m - 1) // m) * m


# ----------------------- relative path (B, D*D, H, W) ----------------------- #
_C_CHUNK_MAX = 64  # channel-chunk cap (review: 8 was pipeline-overhead bound)


def _rel_corr_kernel(a_ref, b_ref, o_ref, acc_ref, *, D, k, S, hs):
    # a_ref  : (ckc, La)    channel chunk of feat1 on the p-padded grid (row stride S)
    # b_ref  : (ckc, Lb)    channel chunk of feat2 on the (p+md)-padded grid (stride S)
    # o_ref  : (D*D, hs)    output block (feat1 dtype), written once on the last chunk
    # acc_ref: (D*D, 8, hs) f32 per-sublane partial sums, resident across the chunk axis
    ckc = a_ref.shape[0]
    n8 = ckc // 8
    c = pl.program_id(1)

    @pl.when(c == 0)
    def _init():
        acc_ref[...] = jnp.zeros_like(acc_ref)

    # Hoist the k*k displacement-invariant feat1 window slices: sliced once, reused
    # for all D*D displacements.  (astype is a no-op for f32 features; for bf16
    # features it is cheap VPU work and halves the HBM->VMEM bytes.)
    a_sl = []
    for ki in range(k):
        for kj in range(k):
            off = ki * S + kj
            a_sl.append(
                a_ref[:, off:off + hs].astype(jnp.float32).reshape(n8, 8, hs))

    # D*D*k*k stays small for KYS (<= 81 here); keep statically unrolled.
    # TODO(synk): switch to lax.fori_loop for very large max_displacement/kernel_size.
    for dy in range(D):
        for dx in range(D):
            acc = None
            for ki in range(k):
                for kj in range(k):
                    boff = (dy + ki) * S + (dx + kj)
                    b_win = b_ref[:, boff:boff + hs].astype(
                        jnp.float32).reshape(n8, 8, hs)
                    prod = a_sl[ki * k + kj] * b_win
                    acc = prod if acc is None else acc + prod
            # VALU-only reduce across vreg groups; the expensive 8->1 cross-sublane
            # (XLU) reduce is deferred to the last channel chunk.
            part = jnp.sum(acc, axis=0)          # (8, hs)
            acc_ref[dy * D + dx] += part          # unmasked 8-sublane RMW into VMEM

    @pl.when(c == pl.num_programs(1) - 1)
    def _fin():
        for d in range(D * D):
            o_ref[d:d + 1, :] = jnp.sum(
                acc_ref[d], axis=0, keepdims=True).astype(o_ref.dtype)


def correlation_relative(feat1, feat2, kernel_size, max_displacement):
    """Correlation volume, shape (B, D*D, H, W), D = 2*max_displacement + 1."""
    B, C, H, W = feat1.shape
    k = kernel_size
    p = (k - 1) // 2
    md = max_displacement
    D = 2 * md + 1

    # Common row stride of both flattened grids; output lanes padded to a multiple
    # of 128 so accumulator stores and shifted-slice loads are lane-dense.
    S = W + 2 * p + 2 * md
    HS = H * S
    hs = _round_up(HS, 128)

    # feat1 on the p-padded grid, flattened with row stride S.  The k*k window
    # shifts are folded into the kernel as static lane offsets (no k^2 im2col
    # blow-up of HBM bytes in the wrapper).
    f1p = jnp.pad(feat1, ((0, 0), (0, 0), (p, p), (p, p + 2 * md)))
    a_flat = f1p.reshape(B, C, (H + 2 * p) * S)
    la = _round_up(2 * p * S + 2 * p + hs, 128)
    a_flat = jnp.pad(a_flat, ((0, 0), (0, 0), (0, la - a_flat.shape[-1])))

    # feat2 on the (p+md)-padded grid, flattened with the same row stride S.
    f2p = jnp.pad(feat2, ((0, 0), (0, 0), (p + md, p + md), (p + md, p + md)))
    b_flat = f2p.reshape(B, C, (H + 2 * p + 2 * md) * S)
    lb = _round_up((2 * p + 2 * md) * S + (2 * p + 2 * md) + hs, 128)
    b_flat = jnp.pad(b_flat, ((0, 0), (0, 0), (0, lb - b_flat.shape[-1])))

    # Channel chunking; zero-padded channels contribute zero.
    ckc = min(_C_CHUNK_MAX, _round_up(C, 8))
    cp = _round_up(C, ckc)
    if cp != C:
        a_flat = jnp.pad(a_flat, ((0, 0), (0, cp - C), (0, 0)))
        b_flat = jnp.pad(b_flat, ((0, 0), (0, cp - C), (0, 0)))
    nck = cp // ckc

    kernel = functools.partial(_rel_corr_kernel, D=D, k=k, S=S, hs=hs)
    out_q = pl.pallas_call(
        kernel,
        out_shape=jax.ShapeDtypeStruct((B, D * D, hs), feat1.dtype),
        grid_spec=pltpu.PrefetchScalarGridSpec(
            num_scalar_prefetch=0,
            grid=(B, nck),  # channel-chunk reduction axis last
            in_specs=[
                pl.BlockSpec((None, ckc, la), lambda b, c: (b, c, 0)),
                pl.BlockSpec((None, ckc, lb), lambda b, c: (b, c, 0)),
            ],
            out_specs=pl.BlockSpec((None, D * D, hs), lambda b, c: (b, 0, 0)),
            scratch_shapes=[pltpu.VMEM((D * D, 8, hs), jnp.float32)],
        ),
        compiler_params=pltpu.CompilerParams(
            dimension_semantics=("parallel", "arbitrary"),
            vmem_limit_bytes=48 * 1024 * 1024,
        ),
    )(a_flat, b_flat)

    # Drop padded lanes and the junk columns of the q layout.
    return out_q[:, :, :HS].reshape(B, D * D, H, S)[:, :, :, :W]


# ----------------------- absolute path (B, H*W, H, W) ----------------------- #
def _abs_gram_kernel(inband_ref, jmap_ref, b2t_ref, a_ref, rcr_ref, rcc_ref,
                     o_ref, *, md):
    # inband_ref: (n_i, n_j) int32 SMEM, 1 iff tile (i, j) intersects the band
    # jmap_ref  : used only by the index_maps (clamped a_col / rcc block index)
    # b2t_ref   : (TQ, CK) bf16 im2col(feat2) rows for this output-row tile
    # a_ref     : (CK, TN) bf16 im2col(feat1) cols for this output-col tile
    # rcr_ref   : (TQ, 2)  int32 (row, col) of each feat2 position in this tile
    # rcc_ref   : (2, TN)  int32 (row, col) of each feat1 position in this tile
    del jmap_ref
    i = pl.program_id(1)
    j = pl.program_id(2)
    live = inband_ref[i, j] != 0

    @pl.when(live)
    def _compute():
        # Single native bf16 MXU pass, f32 accumulation.
        g = jnp.dot(b2t_ref[...], a_ref[...], preferred_element_type=jnp.float32)
        r2 = rcr_ref[:, 0:1]
        c2 = rcr_ref[:, 1:2]
        r1 = rcc_ref[0:1, :]
        c1 = rcc_ref[1:2, :]
        band = (jnp.abs(r2 - r1) <= md) & (jnp.abs(c2 - c1) <= md)
        o_ref[...] = jnp.where(band, g, jnp.zeros_like(g)).astype(o_ref.dtype)

    @pl.when(jnp.logical_not(live))
    def _zero():
        o_ref[...] = jnp.zeros_like(o_ref)


def correlation_absolute(feat1, feat2, kernel_size, max_displacement):
    """remap_cost_volume(correlation(feat1, feat2)) as a band-masked Gram matmul.

    Returns shape (B, H*W, H, W): entry [b, r2*W+c2, r1, c1] is the correlation of
    the feat1 window at (r1, c1) with the feat2 window at (r2, c2) iff
    |r2-r1| <= md and |c2-c1| <= md, else 0 (torch remap_cost_volume semantics).
    """
    B, C, H, W = feat1.shape
    k = kernel_size
    p = (k - 1) // 2
    md = max_displacement
    HW = H * W
    ck = C * k * k

    # im2col over the k*k window (contraction axis of the Gram matmul).
    f1p = jnp.pad(feat1, ((0, 0), (0, 0), (p, p), (p, p)))
    f2p = jnp.pad(feat2, ((0, 0), (0, 0), (p, p), (p, p)))
    a_cols = [f1p[:, :, ki:ki + H, kj:kj + W].reshape(B, C, HW)
              for ki in range(k) for kj in range(k)]
    b_cols = [f2p[:, :, ki:ki + H, kj:kj + W].reshape(B, C, HW)
              for ki in range(k) for kj in range(k)]
    # bf16 MXU operands (f32 accumulation in-kernel): one native MXU pass instead of
    # 3-6 chained passes at f32 HIGHEST, and half the operand DMA bytes.
    a_col = jnp.concatenate(a_cols, axis=1).astype(jnp.bfloat16)                   # (B, CK, HW)
    b2t = jnp.concatenate(b_cols, axis=1).transpose(0, 2, 1).astype(jnp.bfloat16)  # (B, HW, CK)

    # Pad HW to tile multiples (no whole-matrix fallback tiles).
    tq = 128
    hw_r = _round_up(HW, tq)
    tn = 256 if _round_up(HW, 128) % 256 == 0 else 128
    hw_c = _round_up(HW, tn)
    n_i = hw_r // tq
    n_j = hw_c // tn
    if hw_r != HW:
        b2t = jnp.pad(b2t, ((0, 0), (0, hw_r - HW), (0, 0)))
    if hw_c != HW:
        a_col = jnp.pad(a_col, ((0, 0), (0, 0), (0, hw_c - HW)))

    # (row, col) tables -> per-element band mask without in-kernel div/mod.
    q = jnp.arange(HW, dtype=jnp.int32)
    r = q // W
    c = q % W
    sent = H + W + md + 64  # out-of-band sentinel for padded positions
    rcr = jnp.stack([jnp.pad(r, (0, hw_r - HW), constant_values=-sent),
                     jnp.pad(c, (0, hw_r - HW), constant_values=-sent)], axis=1)
    rcc = jnp.stack([jnp.pad(r, (0, hw_c - HW), constant_values=sent),
                     jnp.pad(c, (0, hw_c - HW), constant_values=sent)], axis=0)

    # Tile-level band tables (scalar-prefetched to SMEM):
    #  * inband[i, j]: does tile (i, j) contain any in-band (q2, q1) pair?
    #  * jmap[i, j]  : j clamped into the in-band j-range of row tile i, so the
    #    a_col / rcc panel DMA is only re-issued for (essentially) in-band tiles.
    band = ((jnp.abs(r[:, None] - r[None, :]) <= md) &
            (jnp.abs(c[:, None] - c[None, :]) <= md))
    band = jnp.pad(band, ((0, hw_r - HW), (0, hw_c - HW)))
    inband = band.reshape(n_i, tq, n_j, tn).any(axis=(1, 3))
    has = inband.any(axis=1)
    j_lo = jnp.where(has, jnp.argmax(inband, axis=1), 0)
    j_hi = jnp.where(has, n_j - 1 - jnp.argmax(inband[:, ::-1], axis=1), 0)
    jmap = jnp.clip(jnp.arange(n_j)[None, :],
                    j_lo[:, None], j_hi[:, None]).astype(jnp.int32)
    inband_i32 = inband.astype(jnp.int32)

    kernel = functools.partial(_abs_gram_kernel, md=md)
    out = pl.pallas_call(
        kernel,
        out_shape=jax.ShapeDtypeStruct((B, hw_r, hw_c), feat1.dtype),
        grid_spec=pltpu.PrefetchScalarGridSpec(
            num_scalar_prefetch=2,
            grid=(B, n_i, n_j),
            in_specs=[
                pl.BlockSpec((None, tq, ck), lambda b, i, j, ib, jm: (b, i, 0)),
                pl.BlockSpec((None, ck, tn),
                             lambda b, i, j, ib, jm: (b, 0, jm[i, j])),
                pl.BlockSpec((tq, 2), lambda b, i, j, ib, jm: (i, 0)),
                pl.BlockSpec((2, tn), lambda b, i, j, ib, jm: (0, jm[i, j])),
            ],
            out_specs=pl.BlockSpec((None, tq, tn),
                                   lambda b, i, j, ib, jm: (b, i, j)),
        ),
        compiler_params=pltpu.CompilerParams(
            dimension_semantics=("parallel", "parallel", "parallel"),
            vmem_limit_bytes=48 * 1024 * 1024,
        ),
    )(inband_i32, jmap, b2t, a_col, rcr, rcc)

    return out[:, :HW, :HW].reshape(B, HW, H, W)


# ------------------------------ module forward ------------------------------ #
def cost_volume_forward(feat1, feat2, *, kernel_size, max_displacement,
                        stride=1, abs_coordinate_output=False):
    """CostVolume.forward (the module has no learnable parameters)."""
    assert stride == 1, "stride != 1 not supported"
    assert kernel_size % 2 == 1, "only odd kernel_size supported"
    assert feat1.ndim == 4 and feat2.ndim == 4, "Expect 4 dimensional inputs"
    if abs_coordinate_output:
        return correlation_absolute(feat1, feat2, kernel_size, max_displacement)
    return correlation_relative(feat1, feat2, kernel_size, max_displacement)


cost_volume_forward_jit = jax.jit(
    cost_volume_forward,
    static_argnames=("kernel_size", "max_displacement", "stride",
                     "abs_coordinate_output"))


# ---------------------------- pure-JAX references ---------------------------- #
def _correlation_ref(feat1, feat2, k, md):
    """Elementwise f32 reference for SpatialCorrelationSampler, (B, D*D, H, W)."""
    B, C, H, W = feat1.shape
    p = (k - 1) // 2
    D = 2 * md + 1
    f1p = jnp.pad(feat1, ((0, 0), (0, 0), (p, p), (p, p)))
    f2p = jnp.pad(feat2, ((0, 0), (0, 0), (p + md, p + md), (p + md, p + md)))
    outs = []
    for dy in range(D):
        for dx in range(D):
            acc = jnp.zeros((B, H, W), jnp.float32)
            for ki in range(k):
                for kj in range(k):
                    acc = acc + jnp.sum(
                        f1p[:, :, ki:ki + H, kj:kj + W]
                        * f2p[:, :, dy + ki:dy + ki + H, dx + kj:dx + kj + W],
                        axis=1)
            outs.append(acc)
    return jnp.stack(outs, axis=1)


def _remap_cost_volume_ref(cv5, md):
    """Pure-JAX mirror of remap_cost_volume: (B, D, D, H, W) -> (B, H, W, H, W)."""
    B, Dn, _, H, W = cv5.shape
    i = jnp.arange(H).reshape(H, 1, 1, 1)
    j = jnp.arange(W).reshape(1, W, 1, 1)
    r = jnp.arange(H).reshape(1, 1, H, 1)
    c = jnp.arange(W).reshape(1, 1, 1, W)
    di = i - r + md
    dj = j - c + md
    valid = (di >= 0) & (di < Dn) & (dj >= 0) & (dj < Dn)
    dic = jnp.clip(di, 0, Dn - 1)
    djc = jnp.clip(dj, 0, Dn - 1)
    shape = (H, W, H, W)
    gathered = cv5[:, jnp.broadcast_to(dic, shape), jnp.broadcast_to(djc, shape),
                   jnp.broadcast_to(r, shape), jnp.broadcast_to(c, shape)]
    return jnp.where(valid[None], gathered, jnp.zeros((), cv5.dtype))


# ----------------------------------- main ------------------------------------ #
if __name__ == "__main__":
    key = jax.random.PRNGKey(0)

    # (B, C, H, W, kernel_size, max_displacement)
    configs = [
        (2, 4, 16, 16, 1, 2),   # KYS configuration (kernel_size=1)
        (2, 4, 16, 16, 3, 1),   # kernel_size > 1 (in-kernel k*k window folding)
        (1, 3, 10, 11, 1, 2),   # non-128-aligned HW / odd C -> padding paths
    ]
    for idx, (B, C, H, W, kernel_size, md) in enumerate(configs):
        k1, k2 = jax.random.split(jax.random.fold_in(key, idx))
        feat1 = jax.random.normal(k1, (B, C, H, W), dtype=jnp.float32)
        feat2 = jax.random.normal(k2, (B, C, H, W), dtype=jnp.float32)
        D = 2 * md + 1

        out_rel = jax.block_until_ready(cost_volume_forward_jit(
            feat1, feat2, kernel_size=kernel_size, max_displacement=md,
            abs_coordinate_output=False))
        out_abs = jax.block_until_ready(cost_volume_forward_jit(
            feat1, feat2, kernel_size=kernel_size, max_displacement=md,
            abs_coordinate_output=True))

        assert out_rel.shape == (B, D * D, H, W)
        assert out_abs.shape == (B, H * W, H, W)

        ref_rel = _correlation_ref(feat1, feat2, kernel_size, md)
        # The absolute path uses bf16 MXU operands -> compare against a reference
        # with identically bf16-rounded operands (accumulation is f32 in both).
        f1b = feat1.astype(jnp.bfloat16).astype(jnp.float32)
        f2b = feat2.astype(jnp.bfloat16).astype(jnp.float32)
        ref_abs = _remap_cost_volume_ref(
            _correlation_ref(f1b, f2b, kernel_size, md).reshape(B, D, D, H, W),
            md).reshape(B, H * W, H, W)

        assert jnp.allclose(out_rel, ref_rel, atol=1e-3, rtol=1e-3), (
            f"relative path mismatch (config {idx})")
        assert jnp.allclose(out_abs, ref_abs, atol=2e-3, rtol=2e-3), (
            f"absolute path mismatch (config {idx})")

    print("KERNEL_OK")
</pallas_src>

<mosaic_0001>
module attributes {stable_mosaic.version = 11 : i64} {
  func.func @_rel_corr_kernel(%arg0: i32, %arg1: i32, %arg2: memref<1x8x384xf32, #tpu.memory_space<vmem>>, %arg3: memref<1x8x512xf32, #tpu.memory_space<vmem>>, %arg4: memref<1x25x384xf32, #tpu.memory_space<vmem>>, %arg5: memref<25x8x384xf32, #tpu.memory_space<vmem>>) attributes {dimension_semantics = [#tpu.dimension_semantics<parallel>, #tpu.dimension_semantics<arbitrary>], iteration_bounds = array<i64: 2, 1>, scalar_prefetch = 0 : i64, scratch_operands = 1 : i64, tpu.core_type = #tpu.core_type<tc>, window_params = [{transform_indices = @transform_0, window_bounds = array<i64: 1, 8, 384>}, {transform_indices = @transform_1, window_bounds = array<i64: 1, 8, 512>}, {transform_indices = @transform_2, window_bounds = array<i64: 1, 25, 384>}]} {
    %c0_i32 = arith.constant 0 : i32
    %0 = arith.cmpi eq, %arg1, %c0_i32 : i32
    %1 = arith.extui %0 : i1 to i32
    %c0_i32_0 = arith.constant 0 : i32
    %2 = arith.cmpi ne, %1, %c0_i32_0 : i32
    scf.if %2 {
      %cst_215 = arith.constant 0.000000e+00 : f32
      %284 = vector.broadcast %cst_215 : f32 to vector<25x8x384xf32>
      %c0_216 = arith.constant 0 : index
      %c0_217 = arith.constant 0 : index
      %c0_218 = arith.constant 0 : index
      %285 = vector.load %arg5[%c0_216, %c0_217, %c0_218] : memref<25x8x384xf32, #tpu.memory_space<vmem>>, vector<25x8x384xf32>
      tpu.vector_store %arg5[%c0_216, %c0_217, %c0_218], %284 {strides = array<i32>} : memref<25x8x384xf32, #tpu.memory_space<vmem>>, vector<25x8x384xf32>,
    } else {
    }
    %c0 = arith.constant 0 : index
    %c0_1 = arith.constant 0 : index
    %c0_2 = arith.constant 0 : index
    %3 = vector.load %arg2[%c0, %c0_1, %c0_2] : memref<1x8x384xf32, #tpu.memory_space<vmem>>, vector<1x8x384xf32>
    %4 = vector.shape_cast %3 : vector<1x8x384xf32> to vector<8x384xf32>
    %5 = vector.shape_cast %4 : vector<8x384xf32> to vector<1x8x384xf32>
    %c0_3 = arith.constant 0 : index
    %c0_4 = arith.constant 0 : index
    %c0_5 = arith.constant 0 : index
    %6 = vector.load %arg3[%c0_3, %c0_4, %c0_5] : memref<1x8x512xf32, #tpu.memory_space<vmem>>, vector<1x8x384xf32>
    %7 = vector.shape_cast %6 : vector<1x8x384xf32> to vector<8x384xf32>
    %8 = vector.shape_cast %7 : vector<8x384xf32> to vector<1x8x384xf32>
    %9 = arith.mulf %5, %8 : vector<1x8x384xf32>
    %cst = arith.constant dense<0.000000e+00> : vector<8x384xf32>
    %10 = vector.multi_reduction <add>, %9, %cst [0] : vector<1x8x384xf32> to vector<8x384xf32>
    %c0_6 = arith.constant 0 : index
    %c0_7 = arith.constant 0 : index
    %c0_8 = arith.constant 0 : index
    %11 = vector.load %arg5[%c0_6, %c0_7, %c0_8] : memref<25x8x384xf32, #tpu.memory_space<vmem>>, vector<1x8x384xf32>
    %12 = vector.shape_cast %11 : vector<1x8x384xf32> to vector<8x384xf32>
    %13 = arith.addf %12, %10 : vector<8x384xf32>
    %c0_9 = arith.constant 0 : index
    %c0_10 = arith.constant 0 : index
    %c0_11 = arith.constant 0 : index
    %14 = vector.load %arg5[%c0_9, %c0_10, %c0_11] : memref<25x8x384xf32, #tpu.memory_space<vmem>>, vector<1x8x384xf32>
    %15 = vector.shape_cast %14 : vector<1x8x384xf32> to vector<8x384xf32>
    %16 = vector.shape_cast %13 : vector<8x384xf32> to vector<1x8x384xf32>
    tpu.vector_store %arg5[%c0_9, %c0_10, %c0_11], %16 {strides = array<i32>} : memref<25x8x384xf32, #tpu.memory_space<vmem>>, vector<1x8x384xf32>,
    %c0_12 = arith.constant 0 : index
    %c0_13 = arith.constant 0 : index
    %c1 = arith.constant 1 : index
    %17 = vector.load %arg3[%c0_12, %c0_13, %c1] : memref<1x8x512xf32, #tpu.memory_space<vmem>>, vector<1x8x384xf32>
    %18 = vector.shape_cast %17 : vector<1x8x384xf32> to vector<8x384xf32>
    %19 = vector.shape_cast %18 : vector<8x384xf32> to vector<1x8x384xf32>
    %20 = arith.mulf %5, %19 : vector<1x8x384xf32>
    %cst_14 = arith.constant dense<0.000000e+00> : vector<8x384xf32>
    %21 = vector.multi_reduction <add>, %20, %cst_14 [0] : vector<1x8x384xf32> to vector<8x384xf32>
    %c1_15 = arith.constant 1 : index
    %c0_16 = arith.constant 0 : index
    %c0_17 = arith.constant 0 : index
    %22 = vector.load %arg5[%c1_15, %c0_16, %c0_17] : memref<25x8x384xf32, #tpu.memory_space<vmem>>, vector<1x8x384xf32>
    %23 = vector.shape_cast %22 : vector<1x8x384xf32> to vector<8x384xf32>
    %24 = arith.addf %23, %21 : vector<8x384xf32>
    %c1_18 = arith.constant 1 : index
    %c0_19 = arith.constant 0 : index
    %c0_20 = arith.constant 0 : index
    %25 = vector.load %arg5[%c1_18, %c0_19, %c0_20] : memref<25x8x384xf32, #tpu.memory_space<vmem>>, vector<1x8x384xf32>
    %26 = vector.shape_cast %25 : vector<1x8x384xf32> to vector<8x384xf32>
    %27 = vector.shape_cast %24 : vector<8x384xf32> to vector<1x8x384xf32>
    tpu.vector_store %arg5[%c1_18, %c0_19, %c0_20], %27 {strides = array<i32>} : memref<25x8x384xf32, #tpu.memory_space<vmem>>, vector<1x8x384xf32>,
    %c0_21 = arith.constant 0 : index
    %c0_22 = arith.constant 0 : index
    %c2 = arith.constant 2 : index
    %28 = vector.load %arg3[%c0_21, %c0_22, %c2] : memref<1x8x512xf32, #tpu.memory_space<vmem>>, vector<1x8x384xf32>
    %29 = vector.shape_cast %28 : vector<1x8x384xf32> to vector<8x384xf32>
    %30 = vector.shape_cast %29 : vector<8x384xf32> to vector<1x8x384xf32>
    %31 = arith.mulf %5, %30 : vector<1x8x384xf32>
    %cst_23 = arith.constant dense<0.000000e+00> : vector<8x384xf32>
    %32 = vector.multi_reduction <add>, %31, %cst_23 [0] : vector<1x8x384xf32> to vector<8x384xf32>
    %c2_24 = arith.constant 2 : index
    %c0_25 = arith.constant 0 : index
    %c0_26 = arith.constant 0 : index
    %33 = vector.load %arg5[%c2_24, %c0_25, %c0_26] : memref<25x8x384xf32, #tpu.memory_space<vmem>>, vector<1x8x384xf32>
    %34 = vector.shape_cast %33 : vector<1x8x384xf32> to vector<8x384xf32>
    %35 = arith.addf %34, %32 : vector<8x384xf32>
    %c2_27 = arith.constant 2 : index
    %c0_28 = arith.constant 0 : index
    %c0_29 = arith.constant 0 : index
    %36 = vector.load %arg5[%c2_27, %c0_28, %c0_29] : memref<25x8x384xf32, #tpu.memory_space<vmem>>, vector<1x8x384xf32>
    %37 = vector.shape_cast %36 : vector<1x8x384xf32> to vector<8x384xf32>
    %38 = vector.shape_cast %35 : vector<8x384xf32> to vector<1x8x384xf32>
    tpu.vector_store %arg5[%c2_27, %c0_28, %c0_29], %38 {strides = array<i32>} : memref<25x8x384xf32, #tpu.memory_space<vmem>>, vector<1x8x384xf32>,
    %c0_30 = arith.constant 0 : index
    %c0_31 = arith.constant 0 : index
    %c3 = arith.constant 3 : index
    %39 = vector.load %arg3[%c0_30, %c0_31, %c3] : memref<1x8x512xf32, #tpu.memory_space<vmem>>, vector<1x8x384xf32>
    %40 = vector.shape_cast %39 : vector<1x8x384xf32> to vector<8x384xf32>
    %41 = vector.shape_cast %40 : vector<8x384xf32> to vector<1x8x384xf32>
    %42 = arith.mulf %5, %41 : vector<1x8x384xf32>
    %cst_32 = arith.constant dense<0.000000e+00> : vector<8x384xf32>
    %43 = vector.multi_reduction <add>, %42, %cst_32 [0] : vector<1x8x384xf32> to vector<8x384xf32>
    %c3_33 = arith.constant 3 : index
    %c0_34 = arith.constant 0 : index
    %c0_35 = arith.constant 0 : index
    %44 = vector.load %arg5[%c3_33, %c0_34, %c0_35] : memref<25x8x384xf32, #tpu.memory_space<vmem>>, vector<1x8x384xf32>
    %45 = vector.shape_cast %44 : vector<1x8x384xf32> to vector<8x384xf32>
    %46 = arith.addf %45, %43 : vector<8x384xf32>
    %c3_36 = arith.constant 3 : index
    %c0_37 = arith.constant 0 : index
    %c0_38 = arith.constant 0 : index
    %47 = vector.load %arg5[%c3_36, %c0_37, %c0_38] : memref<25x8x384xf32, #tpu.memory_space<vmem>>, vector<1x8x384xf32>
    %48 = vector.shape_cast %47 : vector<1x8x384xf32> to vector<8x384xf32>
    %49 = vector.shape_cast %46 : vector<8x384xf32> to vector<1x8x384xf32>
    tpu.vector_store %arg5[%c3_36, %c0_37, %c0_38], %49 {strides = array<i32>} : memref<25x8x384xf32, #tpu.memory_space<vmem>>, vector<1x8x384xf32>,
    %c0_39 = arith.constant 0 : index
    %c0_40 = arith.constant 0 : index
    %c4 = arith.constant 4 : index
    %50 = vector.load %arg3[%c0_39, %c0_40, %c4] : memref<1x8x512xf32, #tpu.memory_space<vmem>>, vector<1x8x384xf32>
    %51 = vector.shape_cast %50 : vector<1x8x384xf32> to vector<8x384xf32>
    %52 = vector.shape_cast %51 : vector<8x384xf32> to vector<1x8x384xf32>
    %53 = arith.mulf %5, %52 : vector<1x8x384xf32>
    %cst_41 = arith.constant dense<0.000000e+00> : vector<8x384xf32>
    %54 = vector.multi_reduction <add>, %53, %cst_41 [0] : vector<1x8x384xf32> to vector<8x384xf32>
    %c4_42 = arith.constant 4 : index
    %c0_43 = arith.constant 0 : index
    %c0_44 = arith.constant 0 : index
    %55 = vector.load %arg5[%c4_42, %c0_43, %c0_44] : memref<25x8x384xf32, #tpu.memory_space<vmem>>, vector<1x8x384xf32>
    %56 = vector.shape_cast %55 : vector<1x8x384xf32> to vector<8x384xf32>
    %57 = arith.addf %56, %54 : vector<8x384xf32>
    %c4_45 = arith.constant 4 : index
    %c0_46 = arith.constant 0 : index
    %c0_47 = arith.constant 0 : index
    %58 = vector.load %arg5[%c4_45, %c0_46, %c0_47] : memref<25x8x384xf32, #tpu.memory_space<vmem>>, vector<1x8x384xf32>
    %59 = vector.shape_cast %58 : vector<1x8x384xf32> to vector<8x384xf32>
    %60 = vector.shape_cast %57 : vector<8x384xf32> to vector<1x8x384xf32>
    tpu.vector_store %arg5[%c4_45, %c0_46, %c0_47], %60 {strides = array<i32>} : memref<25x8x384xf32, #tpu.memory_space<vmem>>, vector<1x8x384xf32>,
    %c0_48 = arith.constant 0 : index
    %c0_49 = arith.constant 0 : index
    %c20 = arith.constant 20 : index
    %61 = vector.load %arg3[%c0_48, %c0_49, %c20] : memref<1x8x512xf32, #tpu.memory_space<vmem>>, vector<1x8x384xf32>
    %62 = vector.shape_cast %61 : vector<1x8x384xf32> to vector<8x384xf32>
    %63 = vector.shape_cast %62 : vector<8x384xf32> to vector<1x8x384xf32>
    %64 = arith.mulf %5, %63 : vector<1x8x384xf32>
    %cst_50 = arith.constant dense<0.000000e+00> : vector<8x384xf32>
    %65 = vector.multi_reduction <add>, %64, %cst_50 [0] : vector<1x8x384xf32> to vector<8x384xf32>
    %c5 = arith.constant 5 : index
    %c0_51 = arith.constant 0 : index
    %c0_52 = arith.constant 0 : index
    %66 = vector.load %arg5[%c5, %c0_51, %c0_52] : memref<25x8x384xf32, #tpu.memory_space<vmem>>, vector<1x8x384xf32>
    %67 = vector.shape_cast %66 : vector<1x8x384xf32> to vector<8x384xf32>
    %68 = arith.addf %67, %65 : vector<8x384xf32>
    %c5_53 = arith.constant 5 : index
    %c0_54 = arith.constant 0 : index
    %c0_55 = arith.constant 0 : index
    %69 = vector.load %arg5[%c5_53, %c0_54, %c0_55] : memref<25x8x384xf32, #tpu.memory_space<vmem>>, vector<1x8x384xf32>
    %70 = vector.shape_cast %69 : vector<1x8x384xf32> to vector<8x384xf32>
    %71 = vector.shape_cast %68 : vector<8x384xf32> to vector<1x8x384xf32>
    tpu.vector_store %arg5[%c5_53, %c0_54, %c0_55], %71 {strides = array<i32>} : memref<25x8x384xf32, #tpu.memory_space<vmem>>, vector<1x8x384xf32>,
    %c0_56 = arith.constant 0 : index
    %c0_57 = arith.constant 0 : index
    %c21 = arith.constant 21 : index
    %72 = vector.load %arg3[%c0_56, %c0_57, %c21] : memref<1x8x512xf32, #tpu.memory_space<vmem>>, vector<1x8x384xf32>
    %73 = vector.shape_cast %72 : vector<1x8x384xf32> to vector<8x384xf32>
    %74 = vector.shape_cast %73 : vector<8x384xf32> to vector<1x8x384xf32>
    %75 = arith.mulf %5, %74 : vector<1x8x384xf32>
    %cst_58 = arith.constant dense<0.000000e+00> : vector<8x384xf32>
    %76 = vector.multi_reduction <add>, %75, %cst_58 [0] : vector<1x8x384xf32> to vector<8x384xf32>
    %c6 = arith.constant 6 : index
    %c0_59 = arith.constant 0 : index
    %c0_60 = arith.constant 0 : index
    %77 = vector.load %arg5[%c6, %c0_59, %c0_60] : memref<25x8x384xf32, #tpu.memory_space<vmem>>, vector<1x8x384xf32>
    %78 = vector.shape_cast %77 : vector<1x8x384xf32> to vector<8x384xf32>
    %79 = arith.addf %78, %76 : vector<8x384xf32>
    %c6_61 = arith.constant 6 : index
    %c0_62 = arith.constant 0 : index
    %c0_63 = arith.constant 0 : index
    %80 = vector.load %arg5[%c6_61, %c0_62, %c0_63] : memref<25x8x384xf32, #tpu.memory_space<vmem>>, vector<1x8x384xf32>
    %81 = vector.shape_cast %80 : vector<1x8x384xf32> to vector<8x384xf32>
    %82 = vector.shape_cast %79 : vector<8x384xf32> to vector<1x8x384xf32>
    tpu.vector_store %arg5[%c6_61, %c0_62, %c0_63], %82 {strides = array<i32>} : memref<25x8x384xf32, #tpu.memory_space<vmem>>, vector<1x8x384xf32>,
    %c0_64 = arith.constant 0 : index
    %c0_65 = arith.constant 0 : index
    %c22 = arith.constant 22 : index
    %83 = vector.load %arg3[%c0_64, %c0_65, %c22] : memref<1x8x512xf32, #tpu.memory_space<vmem>>, vector<1x8x384xf32>
    %84 = vector.shape_cast %83 : vector<1x8x384xf32> to vector<8x384xf32>
    %85 = vector.shape_cast %84 : vector<8x384xf32> to vector<1x8x384xf32>
    %86 = arith.mulf %5, %85 : vector<1x8x384xf32>
    %cst_66 = arith.constant dense<0.000000e+00> : vector<8x384xf32>
    %87 = vector.multi_reduction <add>, %86, %cst_66 [0] : vector<1x8x384xf32> to vector<8x384xf32>
    %c7 = arith.constant 7 : index
    %c0_67 = arith.constant 0 : index
    %c0_68 = arith.constant 0 : index
    %88 = vector.load %arg5[%c7, %c0_67, %c0_68] : memref<25x8x384xf32, #tpu.memory_space<vmem>>, vector<1x8x384xf32>
    %89 = vector.shape_cast %88 : vector<1x8x384xf32> to vector<8x384xf32>
    %90 = arith.addf %89, %87 : vector<8x384xf32>
    %c7_69 = arith.constant 7 : index
    %c0_70 = arith.constant 0 : index
    %c0_71 = arith.constant 0 : index
    %91 = vector.load %arg5[%c7_69, %c0_70, %c0_71] : memref<25x8x384xf32, #tpu.memory_space<vmem>>, vector<1x8x384xf32>
    %92 = vector.shape_cast %91 : vector<1x8x384xf32> to vector<8x384xf32>
    %93 = vector.shape_cast %90 : vector<8x384xf32> to vector<1x8x384xf32>
    tpu.vector_store %arg5[%c7_69, %c0_70, %c0_71], %93 {strides = array<i32>} : memref<25x8x384xf32, #tpu.memory_space<vmem>>, vector<1x8x384xf32>,
    %c0_72 = arith.constant 0 : index
    %c0_73 = arith.constant 0 : index
    %c23 = arith.constant 23 : index
    %94 = vector.load %arg3[%c0_72, %c0_73, %c23] : memref<1x8x512xf32, #tpu.memory_space<vmem>>, vector<1x8x384xf32>
    %95 = vector.shape_cast %94 : vector<1x8x384xf32> to vector<8x384xf32>
    %96 = vector.shape_cast %95 : vector<8x384xf32> to vector<1x8x384xf32>
    %97 = arith.mulf %5, %96 : vector<1x8x384xf32>
    %cst_74 = arith.constant dense<0.000000e+00> : vector<8x384xf32>
    %98 = vector.multi_reduction <add>, %97, %cst_74 [0] : vector<1x8x384xf32> to vector<8x384xf32>
    %c8 = arith.constant 8 : index
    %c0_75 = arith.constant 0 : index
    %c0_76 = arith.constant 0 : index
    %99 = vector.load %arg5[%c8, %c0_75, %c0_76] : memref<25x8x384xf32, #tpu.memory_space<vmem>>, vector<1x8x384xf32>
    %100 = vector.shape_cast %99 : vector<1x8x384xf32> to vector<8x384xf32>
    %101 = arith.addf %100, %98 : vector<8x384xf32>
    %c8_77 = arith.constant 8 : index
    %c0_78 = arith.constant 0 : index
    %c0_79 = arith.constant 0 : index
    %102 = vector.load %arg5[%c8_77, %c0_78, %c0_79] : memref<25x8x384xf32, #tpu.memory_space<vmem>>, vector<1x8x384xf32>
    %103 = vector.shape_cast %102 : vector<1x8x384xf32> to vector<8x384xf32>
    %104 = vector.shape_cast %101 : vector<8x384xf32> to vector<1x8x384xf32>
    tpu.vector_store %arg5[%c8_77, %c0_78, %c0_79], %104 {strides = array<i32>} : memref<25x8x384xf32, #tpu.memory_space<vmem>>, vector<1x8x384xf32>,
    %c0_80 = arith.constant 0 : index
    %c0_81 = arith.constant 0 : index
    %c24 = arith.constant 24 : index
    %105 = vector.load %arg3[%c0_80, %c0_81, %c24] : memref<1x8x512xf32, #tpu.memory_space<vmem>>, vector<1x8x384xf32>
    %106 = vector.shape_cast %105 : vector<1x8x384xf32> to vector<8x384xf32>
    %107 = vector.shape_cast %106 : vector<8x384xf32> to vector<1x8x384xf32>
    %108 = arith.mulf %5, %107 : vector<1x8x384xf32>
    %cst_82 = arith.constant dense<0.000000e+00> : vector<8x384xf32>
    %109 = vector.multi_reduction <add>, %108, %cst_82 [0] : vector<1x8x384xf32> to vector<8x384xf32>
    %c9 = arith.constant 9 : index
    %c0_83 = arith.constant 0 : index
    %c0_84 = arith.constant 0 : index
    %110 = vector.load %arg5[%c9, %c0_83, %c0_84] : memref<25x8x384xf32, #tpu.memory_space<vmem>>, vector<1x8x384xf32>
    %111 = vector.shape_cast %110 : vector<1x8x384xf32> to vector<8x384xf32>
    %112 = arith.addf %111, %109 : vector<8x384xf32>
    %c9_85 = arith.constant 9 : index
    %c0_86 = arith.constant 0 : index
    %c0_87 = arith.constant 0 : index
    %113 = vector.load %arg5[%c9_85, %c0_86, %c0_87] : memref<25x8x384xf32, #tpu.memory_space<vmem>>, vector<1x8x384xf32>
    %114 = vector.shape_cast %113 : vector<1x8x384xf32> to vector<8x384xf32>
    %115 = vector.shape_cast %112 : vector<8x384xf32> to vector<1x8x384xf32>
    tpu.vector_store %arg5[%c9_85, %c0_86, %c0_87], %115 {strides = array<i32>} : memref<25x8x384xf32, #tpu.memory_space<vmem>>, vector<1x8x384xf32>,
    %c0_88 = arith.constant 0 : index
    %c0_89 = arith.constant 0 : index
    %c40 = arith.constant 40 : index
    %116 = vector.load %arg3[%c0_88, %c0_89, %c40] : memref<1x8x512xf32, #tpu.memory_space<vmem>>, vector<1x8x384xf32>
    %117 = vector.shape_cast %116 : vector<1x8x384xf32> to vector<8x384xf32>
    %118 = vector.shape_cast %117 : vector<8x384xf32> to vector<1x8x384xf32>
    %119 = arith.mulf %5, %118 : vector<1x8x384xf32>
    %cst_90 = arith.constant dense<0.000000e+00> : vector<8x384xf32>
    %120 = vector.multi_reduction <add>, %119, %cst_90 [0] : vector<1x8x384xf32> to vector<8x384xf32>
    %c10 = arith.constant 10 : index
    %c0_91 = arith.constant 0 : index
    %c0_92 = arith.constant 0 : index
    %121 = vector.load %arg5[%c10, %c0_91, %c0_92] : memref<25x8x384xf32, #tpu.memory_space<vmem>>, vector<1x8x384xf32>
    %122 = vector.shape_cast %121 : vector<1x8x384xf32> to vector<8x384xf32>
    %123 = arith.addf %122, %120 : vector<8x384xf32>
    %c10_93 = arith.constant 10 : index
    %c0_94 = arith.constant 0 : index
    %c0_95 = arith.constant 0 : index
    %124 = vector.load %arg5[%c10_93, %c0_94, %c0_95] : memref<25x8x384xf32, #tpu.memory_space<vmem>>, vector<1x8x384xf32>
    %125 = vector.shape_cast %124 : vector<1x8x384xf32> to vector<8x384xf32>
    %126 = vector.shape_cast %123 : vector<8x384xf32> to vector<1x8x384xf32>
    tpu.vector_store %arg5[%c10_93, %c0_94, %c0_95], %126 {strides = array<i32>} : memref<25x8x384xf32, #tpu.memory_space<vmem>>, vector<1x8x384xf32>,
    %c0_96 = arith.constant 0 : index
    %c0_97 = arith.constant 0 : index
    %c41 = arith.constant 41 : index
    %127 = vector.load %arg3[%c0_96, %c0_97, %c41] : memref<1x8x512xf32, #tpu.memory_space<vmem>>, vector<1x8x384xf32>
    %128 = vector.shape_cast %127 : vector<1x8x384xf32> to vector<8x384xf32>
    %129 = vector.shape_cast %128 : vector<8x384xf32> to vector<1x8x384xf32>
    %130 = arith.mulf %5, %129 : vector<1x8x384xf32>
    %cst_98 = arith.constant dense<0.000000e+00> : vector<8x384xf32>
    %131 = vector.multi_reduction <add>, %130, %cst_98 [0] : vector<1x8x384xf32> to vector<8x384xf32>
    %c11 = arith.constant 11 : index
    %c0_99 = arith.constant 0 : index
    %c0_100 = arith.constant 0 : index
    %132 = vector.load %arg5[%c11, %c0_99, %c0_100] : memref<25x8x384xf32, #tpu.memory_space<vmem>>, vector<1x8x384xf32>
    %133 = vector.shape_cast %132 : vector<1x8x384xf32> to vector<8x384xf32>
    %134 = arith.addf %133, %131 : vector<8x384xf32>
    %c11_101 = arith.constant 11 : index
    %c0_102 = arith.constant 0 : index
    %c0_103 = arith.constant 0 : index
    %135 = vector.load %arg5[%c11_101, %c0_102, %c0_103] : memref<25x8x384xf32, #tpu.memory_space<vmem>>, vector<1x8x384xf32>
    %136 = vector.shape_cast %135 : vector<1x8x384xf32> to vector<8x384xf32>
    %137 = vector.shape_cast %134 : vector<8x384xf32> to vector<1x8x384xf32>
    tpu.vector_store %arg5[%c11_101, %c0_102, %c0_103], %137 {strides = array<i32>} : memref<25x8x384xf32, #tpu.memory_space<vmem>>, vector<1x8x384xf32>,
    %c0_104 = arith.constant 0 : index
    %c0_105 = arith.constant 0 : index
    %c42 = arith.constant 42 : index
    %138 = vector.load %arg3[%c0_104, %c0_105, %c42] : memref<1x8x512xf32, #tpu.memory_space<vmem>>, vector<1x8x384xf32>
    %139 = vector.shape_cast %138 : vector<1x8x384xf32> to vector<8x384xf32>
    %140 = vector.shape_cast %139 : vector<8x384xf32> to vector<1x8x384xf32>
    %141 = arith.mulf %5, %140 : vector<1x8x384xf32>
    %cst_106 = arith.constant dense<0.000000e+00> : vector<8x384xf32>
    %142 = vector.multi_reduction <add>, %141, %cst_106 [0] : vector<1x8x384xf32> to vector<8x384xf32>
    %c12 = arith.constant 12 : index
    %c0_107 = arith.constant 0 : index
    %c0_108 = arith.constant 0 : index
    %143 = vector.load %arg5[%c12, %c0_107, %c0_108] : memref<25x8x384xf32, #tpu.memory_space<vmem>>, vector<1x8x384xf32>
    %144 = vector.shape_cast %143 : vector<1x8x384xf32> to vector<8x384xf32>
    %145 = arith.addf %144, %142 : vector<8x384xf32>
    %c12_109 = arith.constant 12 : index
    %c0_110 = arith.constant 0 : index
    %c0_111 = arith.constant 0 : index
    %146 = vector.load %arg5[%c12_109, %c0_110, %c0_111] : memref<25x8x384xf32, #tpu.memory_space<vmem>>, vector<1x8x384xf32>
    %147 = vector.shape_cast %146 : vector<1x8x384xf32> to vector<8x384xf32>
    %148 = vector.shape_cast %145 : vector<8x384xf32> to vector<1x8x384xf32>
    tpu.vector_store %arg5[%c12_109, %c0_110, %c0_111], %148 {strides = array<i32>} : memref<25x8x384xf32, #tpu.memory_space<vmem>>, vector<1x8x384xf32>,
    %c0_112 = arith.constant 0 : index
    %c0_113 = arith.constant 0 : index
    %c43 = arith.constant 43 : index
    %149 = vector.load %arg3[%c0_112, %c0_113, %c43] : memref<1x8x512xf32, #tpu.memory_space<vmem>>, vector<1x8x384xf32>
    %150 = vector.shape_cast %149 : vector<1x8x384xf32> to vector<8x384xf32>
    %151 = vector.shape_cast %150 : vector<8x384xf32> to vector<1x8x384xf32>
    %152 = arith.mulf %5, %151 : vector<1x8x384xf32>
    %cst_114 = arith.constant dense<0.000000e+00> : vector<8x384xf32>
    %153 = vector.multi_reduction <add>, %152, %cst_114 [0] : vector<1x8x384xf32> to vector<8x384xf32>
    %c13 = arith.constant 13 : index
    %c0_115 = arith.constant 0 : index
    %c0_116 = arith.constant 0 : index
    %154 = vector.load %arg5[%c13, %c0_115, %c0_116] : memref<25x8x384xf32, #tpu.memory_space<vmem>>, vector<1x8x384xf32>
    %155 = vector.shape_cast %154 : vector<1x8x384xf32> to vector<8x384xf32>
    %156 = arith.addf %155, %153 : vector<8x384xf32>
    %c13_117 = arith.constant 13 : index
    %c0_118 = arith.constant 0 : index
    %c0_119 = arith.constant 0 : index
    %157 = vector.load %arg5[%c13_117, %c0_118, %c0_119] : memref<25x8x384xf32, #tpu.memory_space<vmem>>, vector<1x8x384xf32>
    %158 = vector.shape_cast %157 : vector<1x8x384xf32> to vector<8x384xf32>
    %159 = vector.shape_cast %156 : vector<8x384xf32> to vector<1x8x384xf32>
    tpu.vector_store %arg5[%c13_117, %c0_118, %c0_119], %159 {strides = array<i32>} : memref<25x8x384xf32, #tpu.memory_space<vmem>>, vector<1x8x384xf32>,
    %c0_120 = arith.constant 0 : index
    %c0_121 = arith.constant 0 : index
    %c44 = arith.constant 44 : index
    %160 = vector.load %arg3[%c0_120, %c0_121, %c44] : memref<1x8x512xf32, #tpu.memory_space<vmem>>, vector<1x8x384xf32>
    %161 = vector.shape_cast %160 : vector<1x8x384xf32> to vector<8x384xf32>
    %162 = vector.shape_cast %161 : vector<8x384xf32> to vector<1x8x384xf32>
    %163 = arith.mulf %5, %162 : vector<1x8x384xf32>
    %cst_122 = arith.constant dense<0.000000e+00> : vector<8x384xf32>
    %164 = vector.multi_reduction <add>, %163, %cst_122 [0] : vector<1x8x384xf32> to vector<8x384xf32>
    %c14 = arith.constant 14 : index
    %c0_123 = arith.constant 0 : index
    %c0_124 = arith.constant 0 : index
    %165 = vector.load %arg5[%c14, %c0_123, %c0_124] : memref<25x8x384xf32, #tpu.memory_space<vmem>>, vector<1x8x384xf32>
    %166 = vector.shape_cast %165 : vector<1x8x384xf32> to vector<8x384xf32>
    %167 = arith.addf %166, %164 : vector<8x384xf32>
    %c14_125 = arith.constant 14 : index
    %c0_126 = arith.constant 0 : index
    %c0_127 = arith.constant 0 : index
    %168 = vector.load %arg5[%c14_125, %c0_126, %c0_127] : memref<25x8x384xf32, #tpu.memory_space<vmem>>, vector<1x8x384xf32>
    %169 = vector.shape_cast %168 : vector<1x8x384xf32> to vector<8x384xf32>
    %170 = vector.shape_cast %167 : vector<8x384xf32> to vector<1x8x384xf32>
    tpu.vector_store %arg5[%c14_125, %c0_126, %c0_127], %170 {strides = array<i32>} : memref<25x8x384xf32, #tpu.memory_space<vmem>>, vector<1x8x384xf32>,
    %c0_128 = arith.constant 0 : index
    %c0_129 = arith.constant 0 : index
    %c60 = arith.constant 60 : index
    %171 = vector.load %arg3[%c0_128, %c0_129, %c60] : memref<1x8x512xf32, #tpu.memory_space<vmem>>, vector<1x8x384xf32>
    %172 = vector.shape_cast %171 : vector<1x8x384xf32> to vector<8x384xf32>
    %173 = vector.shape_cast %172 : vector<8x384xf32> to vector<1x8x384xf32>
    %174 = arith.mulf %5, %173 : vector<1x8x384xf32>
    %cst_130 = arith.constant dense<0.000000e+00> : vector<8x384xf32>
    %175 = vector.multi_reduction <add>, %174, %cst_130 [0] : vector<1x8x384xf32> to vector<8x384xf32>
    %c15 = arith.constant 15 : index
    %c0_131 = arith.constant 0 : index
    %c0_132 = arith.constant 0 : index
    %176 = vector.load %arg5[%c15, %c0_131, %c0_132] : memref<25x8x384xf32, #tpu.memory_space<vmem>>, vector<1x8x384xf32>
    %177 = vector.shape_cast %176 : vector<1x8x384xf32> to vector<8x384xf32>
    %178 = arith.addf %177, %175 : vector<8x384xf32>
    %c15_133 = arith.constant 15 : index
    %c0_134 = arith.constant 0 : index
    %c0_135 = arith.constant 0 : index
    %179 = vector.load %arg5[%c15_133, %c0_134, %c0_135] : memref<25x8x384xf32, #tpu.memory_space<vmem>>, vector<1x8x384xf32>
    %180 = vector.shape_cast %179 : vector<1x8x384xf32> to vector<8x384xf32>
    %181 = vector.shape_cast %178 : vector<8x384xf32> to vector<1x8x384xf32>
    tpu.vector_store %arg5[%c15_133, %c0_134, %c0_135], %181 {strides = array<i32>} : memref<25x8x384xf32, #tpu.memory_space<vmem>>, vector<1x8x384xf32>,
    %c0_136 = arith.constant 0 : index
    %c0_137 = arith.constant 0 : index
    %c61 = arith.constant 61 : index
    %182 = vector.load %arg3[%c0_136, %c0_137, %c61] : memref<1x8x512xf32, #tpu.memory_space<vmem>>, vector<1x8x384xf32>
    %183 = vector.shape_cast %182 : vector<1x8x384xf32> to vector<8x384xf32>
    %184 = vector.shape_cast %183 : vector<8x384xf32> to vector<1x8x384xf32>
    %185 = arith.mulf %5, %184 : vector<1x8x384xf32>
    %cst_138 = arith.constant dense<0.000000e+00> : vector<8x384xf32>
    %186 = vector.multi_reduction <add>, %185, %cst_138 [0] : vector<1x8x384xf32> to vector<8x384xf32>
    %c16 = arith.constant 16 : index
    %c0_139 = arith.constant 0 : index
    %c0_140 = arith.constant 0 : index
    %187 = vector.load %arg5[%c16, %c0_139, %c0_140] : memref<25x8x384xf32, #tpu.memory_space<vmem>>, vector<1x8x384xf32>
    %188 = vector.shape_cast %187 : vector<1x8x384xf32> to vector<8x384xf32>
    %189 = arith.addf %188, %186 : vector<8x384xf32>
    %c16_141 = arith.constant 16 : index
    %c0_142 = arith.constant 0 : index
    %c0_143 = arith.constant 0 : index
    %190 = vector.load %arg5[%c16_141, %c0_142, %c0_143] : memref<25x8x384xf32, #tpu.memory_space<vmem>>, vector<1x8x384xf32>
    %191 = vector.shape_cast %190 : vector<1x8x384xf32> to vector<8x384xf32>
    %192 = vector.shape_cast %189 : vector<8x384xf32> to vector<1x8x384xf32>
    tpu.vector_store %arg5[%c16_141, %c0_142, %c0_143], %192 {strides = array<i32>} : memref<25x8x384xf32, #tpu.memory_space<vmem>>, vector<1x8x384xf32>,
    %c0_144 = arith.constant 0 : index
    %c0_145 = arith.constant 0 : index
    %c62 = arith.constant 62 : index
    %193 = vector.load %arg3[%c0_144, %c0_145, %c62] : memref<1x8x512xf32, #tpu.memory_space<vmem>>, vector<1x8x384xf32>
    %194 = vector.shape_cast %193 : vector<1x8x384xf32> to vector<8x384xf32>
    %195 = vector.shape_cast %194 : vector<8x384xf32> to vector<1x8x384xf32>
    %196 = arith.mulf %5, %195 : vector<1x8x384xf32>
    %cst_146 = arith.constant dense<0.000000e+00> : vector<8x384xf32>
    %197 = vector.multi_reduction <add>, %196, %cst_146 [0] : vector<1x8x384xf32> to vector<8x384xf32>
    %c17 = arith.constant 17 : index
    %c0_147 = arith.constant 0 : index
    %c0_148 = arith.constant 0 : index
    %198 = vector.load %arg5[%c17, %c0_147, %c0_148] : memref<25x8x384xf32, #tpu.memory_space<vmem>>, vector<1x8x384xf32>
    %199 = vector.shape_cast %198 : vector<1x8x384xf32> to vector<8x384xf32>
    %200 = arith.addf %199, %197 : vector<8x384xf32>
    %c17_149 = arith.constant 17 : index
    %c0_150 = arith.constant 0 : index
    %c0_151 = arith.constant 0 : index
    %201 = vector.load %arg5[%c17_149, %c0_150, %c0_151] : memref<25x8x384xf32, #tpu.memory_space<vmem>>, vector<1x8x384xf32>
    %202 = vector.shape_cast %201 : vector<1x8x384xf32> to vector<8x384xf32>
    %203 = vector.shape_cast %200 : vector<8x384xf32> to vector<1x8x384xf32>
    tpu.vector_store %arg5[%c17_149, %c0_150, %c0_151], %203 {strides = array<i32>} : memref<25x8x384xf32, #tpu.memory_space<vmem>>, vector<1x8x384xf32>,
    %c0_152 = arith.constant 0 : index
    %c0_153 = arith.constant 0 : index
    %c63 = arith.constant 63 : index
    %204 = vector.load %arg3[%c0_152, %c0_153, %c63] : memref<1x8x512xf32, #tpu.memory_space<vmem>>, vector<1x8x384xf32>
    %205 = vector.shape_cast %204 : vector<1x8x384xf32> to vector<8x384xf32>
    %206 = vector.shape_cast %205 : vector<8x384xf32> to vector<1x8x384xf32>
    %207 = arith.mulf %5, %206 : vector<1x8x384xf32>
    %cst_154 = arith.constant dense<0.000000e+00> : vector<8x384xf32>
    %208 = vector.multi_reduction <add>, %207, %cst_154 [0] : vector<1x8x384xf32> to vector<8x384xf32>
    %c18 = arith.constant 18 : index
    %c0_155 = arith.constant 0 : index
    %c0_156 = arith.constant 0 : index
    %209 = vector.load %arg5[%c18, %c0_155, %c0_156] : memref<25x8x384xf32, #tpu.memory_space<vmem>>, vector<1x8x384xf32>
    %210 = vector.shape_cast %209 : vector<1x8x384xf32> to vector<8x384xf32>
    %211 = arith.addf %210, %208 : vector<8x384xf32>
    %c18_157 = arith.constant 18 : index
    %c0_158 = arith.constant 0 : index
    %c0_159 = arith.constant 0 : index
    %212 = vector.load %arg5[%c18_157, %c0_158, %c0_159] : memref<25x8x384xf32, #tpu.memory_space<vmem>>, vector<1x8x384xf32>
    %213 = vector.shape_cast %212 : vector<1x8x384xf32> to vector<8x384xf32>
    %214 = vector.shape_cast %211 : vector<8x384xf32> to vector<1x8x384xf32>
    tpu.vector_store %arg5[%c18_157, %c0_158, %c0_159], %214 {strides = array<i32>} : memref<25x8x384xf32, #tpu.memory_space<vmem>>, vector<1x8x384xf32>,
    %c0_160 = arith.constant 0 : index
    %c0_161 = arith.constant 0 : index
    %c64 = arith.constant 64 : index
    %215 = vector.load %arg3[%c0_160, %c0_161, %c64] : memref<1x8x512xf32, #tpu.memory_space<vmem>>, vector<1x8x384xf32>
    %216 = vector.shape_cast %215 : vector<1x8x384xf32> to vector<8x384xf32>
    %217 = vector.shape_cast %216 : vector<8x384xf32> to vector<1x8x384xf32>
    %218 = arith.mulf %5, %217 : vector<1x8x384xf32>
    %cst_162 = arith.constant dense<0.000000e+00> : vector<8x384xf32>
    %219 = vector.multi_reduction <add>, %218, %cst_162 [0] : vector<1x8x384xf32> to vector<8x384xf32>
    %c19 = arith.constant 19 : index
    %c0_163 = arith.constant 0 : index
    %c0_164 = arith.constant 0 : index
    %220 = vector.load %arg5[%c19, %c0_163, %c0_164] : memref<25x8x384xf32, #tpu.memory_space<vmem>>, vector<1x8x384xf32>
    %221 = vector.shape_cast %220 : vector<1x8x384xf32> to vector<8x384xf32>
    %222 = arith.addf %221, %219 : vector<8x384xf32>
    %c19_165 = arith.constant 19 : index
    %c0_166 = arith.constant 0 : index
    %c0_167 = arith.constant 0 : index
    %223 = vector.load %arg5[%c19_165, %c0_166, %c0_167] : memref<25x8x384xf32, #tpu.memory_space<vmem>>, vector<1x8x384xf32>
    %224 = vector.shape_cast %223 : vector<1x8x384xf32> to vector<8x384xf32>
    %225 = vector.shape_cast %222 : vector<8x384xf32> to vector<1x8x384xf32>
    tpu.vector_store %arg5[%c19_165, %c0_166, %c0_167], %225 {strides = array<i32>} : memref<25x8x384xf32, #tpu.memory_space<vmem>>, vector<1x8x384xf32>,
    %c0_168 = arith.constant 0 : index
    %c0_169 = arith.constant 0 : index
    %c80 = arith.constant 80 : index
    %226 = vector.load %arg3[%c0_168, %c0_169, %c80] : memref<1x8x512xf32, #tpu.memory_space<vmem>>, vector<1x8x384xf32>
    %227 = vector.shape_cast %226 : vector<1x8x384xf32> to vector<8x384xf32>
    %228 = vector.shape_cast %227 : vector<8x384xf32> to vector<1x8x384xf32>
    %229 = arith.mulf %5, %228 : vector<1x8x384xf32>
    %cst_170 = arith.constant dense<0.000000e+00> : vector<8x384xf32>
    %230 = vector.multi_reduction <add>, %229, %cst_170 [0] : vector<1x8x384xf32> to vector<8x384xf32>
    %c20_171 = arith.constant 20 : index
    %c0_172 = arith.constant 0 : index
    %c0_173 = arith.constant 0 : index
    %231 = vector.load %arg5[%c20_171, %c0_172, %c0_173] : memref<25x8x384xf32, #tpu.memory_space<vmem>>, vector<1x8x384xf32>
    %232 = vector.shape_cast %231 : vector<1x8x384xf32> to vector<8x384xf32>
    %233 = arith.addf %232, %230 : vector<8x384xf32>
    %c20_174 = arith.constant 20 : index
    %c0_175 = arith.constant 0 : index
    %c0_176 = arith.constant 0 : index
    %234 = vector.load %arg5[%c20_174, %c0_175, %c0_176] : memref<25x8x384xf32, #tpu.memory_space<vmem>>, vector<1x8x384xf32>
    %235 = vector.shape_cast %234 : vector<1x8x384xf32> to vector<8x384xf32>
    %236 = vector.shape_cast %233 : vector<8x384xf32> to vector<1x8x384xf32>
    tpu.vector_store %arg5[%c20_174, %c0_175, %c0_176], %236 {strides = array<i32>} : memref<25x8x384xf32, #tpu.memory_space<vmem>>, vector<1x8x384xf32>,
    %c0_177 = arith.constant 0 : index
    %c0_178 = arith.constant 0 : index
    %c81 = arith.constant 81 : index
    %237 = vector.load %arg3[%c0_177, %c0_178, %c81] : memref<1x8x512xf32, #tpu.memory_space<vmem>>, vector<1x8x384xf32>
    %238 = vector.shape_cast %237 : vector<1x8x384xf32> to vector<8x384xf32>
    %239 = vector.shape_cast %238 : vector<8x384xf32> to vector<1x8x384xf32>
    %240 = arith.mulf %5, %239 : vector<1x8x384xf32>
    %cst_179 = arith.constant dense<0.000000e+00> : vector<8x384xf32>
    %241 = vector.multi_reduction <add>, %240, %cst_179 [0] : vector<1x8x384xf32> to vector<8x384xf32>
    %c21_180 = arith.constant 21 : index
    %c0_181 = arith.constant 0 : index
    %c0_182 = arith.constant 0 : index
    %242 = vector.load %arg5[%c21_180, %c0_181, %c0_182] : memref<25x8x384xf32, #tpu.memory_space<vmem>>, vector<1x8x384xf32>
    %243 = vector.shape_cast %242 : vector<1x8x384xf32> to vector<8x384xf32>
    %244 = arith.addf %243, %241 : vector<8x384xf32>
    %c21_183 = arith.constant 21 : index
    %c0_184 = arith.constant 0 : index
    %c0_185 = arith.constant 0 : index
    %245 = vector.load %arg5[%c21_183, %c0_184, %c0_185] : memref<25x8x384xf32, #tpu.memory_space<vmem>>, vector<1x8x384xf32>
    %246 = vector.shape_cast %245 : vector<1x8x384xf32> to vector<8x384xf32>
    %247 = vector.shape_cast %244 : vector<8x384xf32> to vector<1x8x384xf32>
    tpu.vector_store %arg5[%c21_183, %c0_184, %c0_185], %247 {strides = array<i32>} : memref<25x8x384xf32, #tpu.memory_space<vmem>>, vector<1x8x384xf32>,
    %c0_186 = arith.constant 0 : index
    %c0_187 = arith.constant 0 : index
    %c82 = arith.constant 82 : index
    %248 = vector.load %arg3[%c0_186, %c0_187, %c82] : memref<1x8x512xf32, #tpu.memory_space<vmem>>, vector<1x8x384xf32>
    %249 = vector.shape_cast %248 : vector<1x8x384xf32> to vector<8x384xf32>
    %250 = vector.shape_cast %249 : vector<8x384xf32> to vector<1x8x384xf32>
    %251 = arith.mulf %5, %250 : vector<1x8x384xf32>
    %cst_188 = arith.constant dense<0.000000e+00> : vector<8x384xf32>
    %252 = vector.multi_reduction <add>, %251, %cst_188 [0] : vector<1x8x384xf32> to vector<8x384xf32>
    %c22_189 = arith.constant 22 : index
    %c0_190 = arith.constant 0 : index
    %c0_191 = arith.constant 0 : index
    %253 = vector.load %arg5[%c22_189, %c0_190, %c0_191] : memref<25x8x384xf32, #tpu.memory_space<vmem>>, vector<1x8x384xf32>
    %254 = vector.shape_cast %253 : vector<1x8x384xf32> to vector<8x384xf32>
    %255 = arith.addf %254, %252 : vector<8x384xf32>
    %c22_192 = arith.constant 22 : index
    %c0_193 = arith.constant 0 : index
    %c0_194 = arith.constant 0 : index
    %256 = vector.load %arg5[%c22_192, %c0_193, %c0_194] : memref<25x8x384xf32, #tpu.memory_space<vmem>>, vector<1x8x384xf32>
    %257 = vector.shape_cast %256 : vector<1x8x384xf32> to vector<8x384xf32>
    %258 = vector.shape_cast %255 : vector<8x384xf32> to vector<1x8x384xf32>
    tpu.vector_store %arg5[%c22_192, %c0_193, %c0_194], %258 {strides = array<i32>} : memref<25x8x384xf32, #tpu.memory_space<vmem>>, vector<1x8x384xf32>,
    %c0_195 = arith.constant 0 : index
    %c0_196 = arith.constant 0 : index
    %c83 = arith.constant 83 : index
    %259 = vector.load %arg3[%c0_195, %c0_196, %c83] : memref<1x8x512xf32, #tpu.memory_space<vmem>>, vector<1x8x384xf32>
    %260 = vector.shape_cast %259 : vector<1x8x384xf32> to vector<8x384xf32>
    %261 = vector.shape_cast %260 : vector<8x384xf32> to vector<1x8x384xf32>
    %262 = arith.mulf %5, %261 : vector<1x8x384xf32>
    %cst_197 = arith.constant dense<0.000000e+00> : vector<8x384xf32>
    %263 = vector.multi_reduction <add>, %262, %cst_197 [0] : vector<1x8x384xf32> to vector<8x384xf32>
    %c23_198 = arith.constant 23 : index
    %c0_199 = arith.constant 0 : index
    %c0_200 = arith.constant 0 : index
    %264 = vector.load %arg5[%c23_198, %c0_199, %c0_200] : memref<25x8x384xf32, #tpu.memory_space<vmem>>, vector<1x8x384xf32>
    %265 = vector.shape_cast %264 : vector<1x8x384xf32> to vector<8x384xf32>
    %266 = arith.addf %265, %263 : vector<8x384xf32>
    %c23_201 = arith.constant 23 : index
    %c0_202 = arith.constant 0 : index
    %c0_203 = arith.constant 0 : index
    %267 = vector.load %arg5[%c23_201, %c0_202, %c0_203] : memref<25x8x384xf32, #tpu.memory_space<vmem>>, vector<1x8x384xf32>
    %268 = vector.shape_cast %267 : vector<1x8x384xf32> to vector<8x384xf32>
    %269 = vector.shape_cast %266 : vector<8x384xf32> to vector<1x8x384xf32>
    tpu.vector_store %arg5[%c23_201, %c0_202, %c0_203], %269 {strides = array<i32>} : memref<25x8x384xf32, #tpu.memory_space<vmem>>, vector<1x8x384xf32>,
    %c0_204 = arith.constant 0 : index
    %c0_205 = arith.constant 0 : index
    %c84 = arith.constant 84 : index
    %270 = vector.load %arg3[%c0_204, %c0_205, %c84] : memref<1x8x512xf32, #tpu.memory_space<vmem>>, vector<1x8x384xf32>
    %271 = vector.shape_cast %270 : vector<1x8x384xf32> to vector<8x384xf32>
    %272 = vector.shape_cast %271 : vector<8x384xf32> to vector<1x8x384xf32>
    %273 = arith.mulf %5, %272 : vector<1x8x384xf32>
    %cst_206 = arith.constant dense<0.000000e+00> : vector<8x384xf32>
    %274 = vector.multi_reduction <add>, %273, %cst_206 [0] : vector<1x8x384xf32> to vector<8x384xf32>
    %c24_207 = arith.constant 24 : index
    %c0_208 = arith.constant 0 : index
    %c0_209 = arith.constant 0 : index
    %275 = vector.load %arg5[%c24_207, %c0_208, %c0_209] : memref<25x8x384xf32, #tpu.memory_space<vmem>>, vector<1x8x384xf32>
    %276 = vector.shape_cast %275 : vector<1x8x384xf32> to vector<8x384xf32>
    %277 = arith.addf %276, %274 : vector<8x384xf32>
    %c24_210 = arith.constant 24 : index
    %c0_211 = arith.constant 0 : index
    %c0_212 = arith.constant 0 : index
    %278 = vector.load %arg5[%c24_210, %c0_211, %c0_212] : memref<25x8x384xf32, #tpu.memory_space<vmem>>, vector<1x8x384xf32>
    %279 = vector.shape_cast %278 : vector<1x8x384xf32> to vector<8x384xf32>
    %280 = vector.shape_cast %277 : vector<8x384xf32> to vector<1x8x384xf32>
    tpu.vector_store %arg5[%c24_210, %c0_211, %c0_212], %280 {strides = array<i32>} : memref<25x8x384xf32, #tpu.memory_space<vmem>>, vector<1x8x384xf32>,
    %c0_i32_213 = arith.constant 0 : i32
    %281 = arith.cmpi eq, %arg1, %c0_i32_213 : i32
    %282 = arith.extui %281 : i1 to i32
    %c0_i32_214 = arith.constant 0 : i32
    %283 = arith.cmpi ne, %282, %c0_i32_214 : i32
    scf.if %283 {
      %c0_215 = arith.constant 0 : index
      %c0_216 = arith.constant 0 : index
      %c0_217 = arith.constant 0 : index
      %284 = vector.load %arg5[%c0_215, %c0_216, %c0_217] : memref<25x8x384xf32, #tpu.memory_space<vmem>>, vector<1x8x384xf32>
      %285 = vector.shape_cast %284 : vector<1x8x384xf32> to vector<8x384xf32>
      %cst_218 = arith.constant dense<0.000000e+00> : vector<384xf32>
      %286 = vector.multi_reduction <add>, %285, %cst_218 [0] : vector<8x384xf32> to vector<384xf32>
      %287 = vector.shape_cast %286 : vector<384xf32> to vector<1x384xf32>
      %c0_219 = arith.constant 0 : index
      %c0_220 = arith.constant 0 : index
      %c0_221 = arith.constant 0 : index
      %288 = vector.load %arg4[%c0_219, %c0_220, %c0_221] : memref<1x25x384xf32, #tpu.memory_space<vmem>>, vector<1x1x384xf32>
      %289 = vector.shape_cast %288 : vector<1x1x384xf32> to vector<1x384xf32>
      %290 = vector.shape_cast %287 : vector<1x384xf32> to vector<1x1x384xf32>
      tpu.vector_store %arg4[%c0_219, %c0_220, %c0_221], %290 {strides = array<i32>} : memref<1x25x384xf32, #tpu.memory_space<vmem>>, vector<1x1x384xf32>,
      %c1_222 = arith.constant 1 : index
      %c0_223 = arith.constant 0 : index
      %c0_224 = arith.constant 0 : index
      %291 = vector.load %arg5[%c1_222, %c0_223, %c0_224] : memref<25x8x384xf32, #tpu.memory_space<vmem>>, vector<1x8x384xf32>
      %292 = vector.shape_cast %291 : vector<1x8x384xf32> to vector<8x384xf32>
      %cst_225 = arith.constant dense<0.000000e+00> : vector<384xf32>
      %293 = vector.multi_reduction <add>, %292, %cst_225 [0] : vector<8x384xf32> to vector<384xf32>
      %294 = vector.shape_cast %293 : vector<384xf32> to vector<1x384xf32>
      %c0_226 = arith.constant 0 : index
      %c1_227 = arith.constant 1 : index
      %c0_228 = arith.constant 0 : index
      %295 = vector.load %arg4[%c0_226, %c1_227, %c0_228] : memref<1x25x384xf32, #tpu.memory_space<vmem>>, vector<1x1x384xf32>
      %296 = vector.shape_cast %295 : vector<1x1x384xf32> to vector<1x384xf32>
      %297 = vector.shape_cast %294 : vector<1x384xf32> to vector<1x1x384xf32>
      tpu.vector_store %arg4[%c0_226, %c1_227, %c0_228], %297 {strides = array<i32>} : memref<1x25x384xf32, #tpu.memory_space<vmem>>, vector<1x1x384xf32>,
      %c2_229 = arith.constant 2 : index
      %c0_230 = arith.constant 0 : index
      %c0_231 = arith.constant 0 : index
      %298 = vector.load %arg5[%c2_229, %c0_230, %c0_231] : memref<25x8x384xf32, #tpu.memory_space<vmem>>, vector<1x8x384xf32>
      %299 = vector.shape_cast %298 : vector<1x8x384xf32> to vector<8x384xf32>
      %cst_232 = arith.constant dense<0.000000e+00> : vector<384xf32>
      %300 = vector.multi_reduction <add>, %299, %cst_232 [0] : vector<8x384xf32> to vector<384xf32>
      %301 = vector.shape_cast %300 : vector<384xf32> to vector<1x384xf32>
      %c0_233 = arith.constant 0 : index
      %c2_234 = arith.constant 2 : index
      %c0_235 = arith.constant 0 : index
      %302 = vector.load %arg4[%c0_233, %c2_234, %c0_235] : memref<1x25x384xf32, #tpu.memory_space<vmem>>, vector<1x1x384xf32>
      %303 = vector.shape_cast %302 : vector<1x1x384xf32> to vector<1x384xf32>
      %304 = vector.shape_cast %301 : vector<1x384xf32> to vector<1x1x384xf32>
      tpu.vector_store %arg4[%c0_233, %c2_234, %c0_235], %304 {strides = array<i32>} : memref<1x25x384xf32, #tpu.memory_space<vmem>>, vector<1x1x384xf32>,
      %c3_236 = arith.constant 3 : index
      %c0_237 = arith.constant 0 : index
      %c0_238 = arith.constant 0 : index
      %305 = vector.load %arg5[%c3_236, %c0_237, %c0_238] : memref<25x8x384xf32, #tpu.memory_space<vmem>>, vector<1x8x384xf32>
      %306 = vector.shape_cast %305 : vector<1x8x384xf32> to vector<8x384xf32>
      %cst_239 = arith.constant dense<0.000000e+00> : vector<384xf32>
      %307 = vector.multi_reduction <add>, %306, %cst_239 [0] : vector<8x384xf32> to vector<384xf32>
      %308 = vector.shape_cast %307 : vector<384xf32> to vector<1x384xf32>
      %c0_240 = arith.constant 0 : index
      %c3_241 = arith.constant 3 : index
      %c0_242 = arith.constant 0 : index
      %309 = vector.load %arg4[%c0_240, %c3_241, %c0_242] : memref<1x25x384xf32, #tpu.memory_space<vmem>>, vector<1x1x384xf32>
      %310 = vector.shape_cast %309 : vector<1x1x384xf32> to vector<1x384xf32>
      %311 = vector.shape_cast %308 : vector<1x384xf32> to vector<1x1x384xf32>
      tpu.vector_store %arg4[%c0_240, %c3_241, %c0_242], %311 {strides = array<i32>} : memref<1x25x384xf32, #tpu.memory_space<vmem>>, vector<1x1x384xf32>,
      %c4_243 = arith.constant 4 : index
      %c0_244 = arith.constant 0 : index
      %c0_245 = arith.constant 0 : index
      %312 = vector.load %arg5[%c4_243, %c0_244, %c0_245] : memref<25x8x384xf32, #tpu.memory_space<vmem>>, vector<1x8x384xf32>
      %313 = vector.shape_cast %312 : vector<1x8x384xf32> to vector<8x384xf32>
      %cst_246 = arith.constant dense<0.000000e+00> : vector<384xf32>
      %314 = vector.multi_reduction <add>, %313, %cst_246 [0] : vector<8x384xf32> to vector<384xf32>
      %315 = vector.shape_cast %314 : vector<384xf32> to vector<1x384xf32>
      %c0_247 = arith.constant 0 : index
      %c4_248 = arith.constant 4 : index
      %c0_249 = arith.constant 0 : index
      %316 = vector.load %arg4[%c0_247, %c4_248, %c0_249] : memref<1x25x384xf32, #tpu.memory_space<vmem>>, vector<1x1x384xf32>
      %317 = vector.shape_cast %316 : vector<1x1x384xf32> to vector<1x384xf32>
      %318 = vector.shape_cast %315 : vector<1x384xf32> to vector<1x1x384xf32>
      tpu.vector_store %arg4[%c0_247, %c4_248, %c0_249], %318 {strides = array<i32>} : memref<1x25x384xf32, #tpu.memory_space<vmem>>, vector<1x1x384xf32>,
      %c5_250 = arith.constant 5 : index
      %c0_251 = arith.constant 0 : index
      %c0_252 = arith.constant 0 : index
      %319 = vector.load %arg5[%c5_250, %c0_251, %c0_252] : memref<25x8x384xf32, #tpu.memory_space<vmem>>, vector<1x8x384xf32>
      %320 = vector.shape_cast %319 : vector<1x8x384xf32> to vector<8x384xf32>
      %cst_253 = arith.constant dense<0.000000e+00> : vector<384xf32>
      %321 = vector.multi_reduction <add>, %320, %cst_253 [0] : vector<8x384xf32> to vector<384xf32>
      %322 = vector.shape_cast %321 : vector<384xf32> to vector<1x384xf32>
      %c0_254 = arith.constant 0 : index
      %c5_255 = arith.constant 5 : index
      %c0_256 = arith.constant 0 : index
      %323 = vector.load %arg4[%c0_254, %c5_255, %c0_256] : memref<1x25x384xf32, #tpu.memory_space<vmem>>, vector<1x1x384xf32>
      %324 = vector.shape_cast %323 : vector<1x1x384xf32> to vector<1x384xf32>
      %325 = vector.shape_cast %322 : vector<1x384xf32> to vector<1x1x384xf32>
      tpu.vector_store %arg4[%c0_254, %c5_255, %c0_256], %325 {strides = array<i32>} : memref<1x25x384xf32, #tpu.memory_space<vmem>>, vector<1x1x384xf32>,
      %c6_257 = arith.constant 6 : index
      %c0_258 = arith.constant 0 : index
      %c0_259 = arith.constant 0 : index
      %326 = vector.load %arg5[%c6_257, %c0_258, %c0_259] : memref<25x8x384xf32, #tpu.memory_space<vmem>>, vector<1x8x384xf32>
      %327 = vector.shape_cast %326 : vector<1x8x384xf32> to vector<8x384xf32>
      %cst_260 = arith.constant dense<0.000000e+00> : vector<384xf32>
      %328 = vector.multi_reduction <add>, %327, %cst_260 [0] : vector<8x384xf32> to vector<384xf32>
      %329 = vector.shape_cast %328 : vector<384xf32> to vector<1x384xf32>
      %c0_261 = arith.constant 0 : index
      %c6_262 = arith.constant 6 : index
      %c0_263 = arith.constant 0 : index
      %330 = vector.load %arg4[%c0_261, %c6_262, %c0_263] : memref<1x25x384xf32, #tpu.memory_space<vmem>>, vector<1x1x384xf32>
      %331 = vector.shape_cast %330 : vector<1x1x384xf32> to vector<1x384xf32>
      %332 = vector.shape_cast %329 : vector<1x384xf32> to vector<1x1x384xf32>
      tpu.vector_store %arg4[%c0_261, %c6_262, %c0_263], %332 {strides = array<i32>} : memref<1x25x384xf32, #tpu.memory_space<vmem>>, vector<1x1x384xf32>,
      %c7_264 = arith.constant 7 : index
      %c0_265 = arith.constant 0 : index
      %c0_266 = arith.constant 0 : index
      %333 = vector.load %arg5[%c7_264, %c0_265, %c0_266] : memref<25x8x384xf32, #tpu.memory_space<vmem>>, vector<1x8x384xf32>
      %334 = vector.shape_cast %333 : vector<1x8x384xf32> to vector<8x384xf32>
      %cst_267 = arith.constant dense<0.000000e+00> : vector<384xf32>
      %335 = vector.multi_reduction <add>, %334, %cst_267 [0] : vector<8x384xf32> to vector<384xf32>
      %336 = vector.shape_cast %335 : vector<384xf32> to vector<1x384xf32>
      %c0_268 = arith.constant 0 : index
      %c7_269 = arith.constant 7 : index
      %c0_270 = arith.constant 0 : index
      %337 = vector.load %arg4[%c0_268, %c7_269, %c0_270] : memref<1x25x384xf32, #tpu.memory_space<vmem>>, vector<1x1x384xf32>
      %338 = vector.shape_cast %337 : vector<1x1x384xf32> to vector<1x384xf32>
      %339 = vector.shape_cast %336 : vector<1x384xf32> to vector<1x1x384xf32>
      tpu.vector_store %arg4[%c0_268, %c7_269, %c0_270], %339 {strides = array<i32>} : memref<1x25x384xf32, #tpu.memory_space<vmem>>, vector<1x1x384xf32>,
      %c8_271 = arith.constant 8 : index
      %c0_272 = arith.constant 0 : index
      %c0_273 = arith.constant 0 : index
      %340 = vector.load %arg5[%c8_271, %c0_272, %c0_273] : memref<25x8x384xf32, #tpu.memory_space<vmem>>, vector<1x8x384xf32>
      %341 = vector.shape_cast %340 : vector<1x8x384xf32> to vector<8x384xf32>
      %cst_274 = arith.constant dense<0.000000e+00> : vector<384xf32>
      %342 = vector.multi_reduction <add>, %341, %cst_274 [0] : vector<8x384xf32> to vector<384xf32>
      %343 = vector.shape_cast %342 : vector<384xf32> to vector<1x384xf32>
      %c0_275 = arith.constant 0 : index
      %c8_276 = arith.constant 8 : index
      %c0_277 = arith.constant 0 : index
      %344 = vector.load %arg4[%c0_275, %c8_276, %c0_277] : memref<1x25x384xf32, #tpu.memory_space<vmem>>, vector<1x1x384xf32>
      %345 = vector.shape_cast %344 : vector<1x1x384xf32> to vector<1x384xf32>
      %346 = vector.shape_cast %343 : vector<1x384xf32> to vector<1x1x384xf32>
      tpu.vector_store %arg4[%c0_275, %c8_276, %c0_277], %346 {strides = array<i32>} : memref<1x25x384xf32, #tpu.memory_space<vmem>>, vector<1x1x384xf32>,
      %c9_278 = arith.constant 9 : index
      %c0_279 = arith.constant 0 : index
      %c0_280 = arith.constant 0 : index
      %347 = vector.load %arg5[%c9_278, %c0_279, %c0_280] : memref<25x8x384xf32, #tpu.memory_space<vmem>>, vector<1x8x384xf32>
      %348 = vector.shape_cast %347 : vector<1x8x384xf32> to vector<8x384xf32>
      %cst_281 = arith.constant dense<0.000000e+00> : vector<384xf32>
      %349 = vector.multi_reduction <add>, %348, %cst_281 [0] : vector<8x384xf32> to vector<384xf32>
      %350 = vector.shape_cast %349 : vector<384xf32> to vector<1x384xf32>
      %c0_282 = arith.constant 0 : index
      %c9_283 = arith.constant 9 : index
      %c0_284 = arith.constant 0 : index
      %351 = vector.load %arg4[%c0_282, %c9_283, %c0_284] : memref<1x25x384xf32, #tpu.memory_space<vmem>>, vector<1x1x384xf32>
      %352 = vector.shape_cast %351 : vector<1x1x384xf32> to vector<1x384xf32>
      %353 = vector.shape_cast %350 : vector<1x384xf32> to vector<1x1x384xf32>
      tpu.vector_store %arg4[%c0_282, %c9_283, %c0_284], %353 {strides = array<i32>} : memref<1x25x384xf32, #tpu.memory_space<vmem>>, vector<1x1x384xf32>,
      %c10_285 = arith.constant 10 : index
      %c0_286 = arith.constant 0 : index
      %c0_287 = arith.constant 0 : index
      %354 = vector.load %arg5[%c10_285, %c0_286, %c0_287] : memref<25x8x384xf32, #tpu.memory_space<vmem>>, vector<1x8x384xf32>
      %355 = vector.shape_cast %354 : vector<1x8x384xf32> to vector<8x384xf32>
      %cst_288 = arith.constant dense<0.000000e+00> : vector<384xf32>
      %356 = vector.multi_reduction <add>, %355, %cst_288 [0] : vector<8x384xf32> to vector<384xf32>
      %357 = vector.shape_cast %356 : vector<384xf32> to vector<1x384xf32>
      %c0_289 = arith.constant 0 : index
      %c10_290 = arith.constant 10 : index
      %c0_291 = arith.constant 0 : index
      %358 = vector.load %arg4[%c0_289, %c10_290, %c0_291] : memref<1x25x384xf32, #tpu.memory_space<vmem>>, vector<1x1x384xf32>
      %359 = vector.shape_cast %358 : vector<1x1x384xf32> to vector<1x384xf32>
      %360 = vector.shape_cast %357 : vector<1x384xf32> to vector<1x1x384xf32>
      tpu.vector_store %arg4[%c0_289, %c10_290, %c0_291], %360 {strides = array<i32>} : memref<1x25x384xf32, #tpu.memory_space<vmem>>, vector<1x1x384xf32>,
      %c11_292 = arith.constant 11 : index
      %c0_293 = arith.constant 0 : index
      %c0_294 = arith.constant 0 : index
      %361 = vector.load %arg5[%c11_292, %c0_293, %c0_294] : memref<25x8x384xf32, #tpu.memory_space<vmem>>, vector<1x8x384xf32>
      %362 = vector.shape_cast %361 : vector<1x8x384xf32> to vector<8x384xf32>
      %cst_295 = arith.constant dense<0.000000e+00> : vector<384xf32>
      %363 = vector.multi_reduction <add>, %362, %cst_295 [0] : vector<8x384xf32> to vector<384xf32>
      %364 = vector.shape_cast %363 : vector<384xf32> to vector<1x384xf32>
      %c0_296 = arith.constant 0 : index
      %c11_297 = arith.constant 11 : index
      %c0_298 = arith.constant 0 : index
      %365 = vector.load %arg4[%c0_296, %c11_297, %c0_298] : memref<1x25x384xf32, #tpu.memory_space<vmem>>, vector<1x1x384xf32>
      %366 = vector.shape_cast %365 : vector<1x1x384xf32> to vector<1x384xf32>
      %367 = vector.shape_cast %364 : vector<1x384xf32> to vector<1x1x384xf32>
      tpu.vector_store %arg4[%c0_296, %c11_297, %c0_298], %367 {strides = array<i32>} : memref<1x25x384xf32, #tpu.memory_space<vmem>>, vector<1x1x384xf32>,
      %c12_299 = arith.constant 12 : index
      %c0_300 = arith.constant 0 : index
      %c0_301 = arith.constant 0 : index
      %368 = vector.load %arg5[%c12_299, %c0_300, %c0_301] : memref<25x8x384xf32, #tpu.memory_space<vmem>>, vector<1x8x384xf32>
      %369 = vector.shape_cast %368 : vector<1x8x384xf32> to vector<8x384xf32>
      %cst_302 = arith.constant dense<0.000000e+00> : vector<384xf32>
      %370 = vector.multi_reduction <add>, %369, %cst_302 [0] : vector<8x384xf32> to vector<384xf32>
      %371 = vector.shape_cast %370 : vector<384xf32> to vector<1x384xf32>
      %c0_303 = arith.constant 0 : index
      %c12_304 = arith.constant 12 : index
      %c0_305 = arith.constant 0 : index
      %372 = vector.load %arg4[%c0_303, %c12_304, %c0_305] : memref<1x25x384xf32, #tpu.memory_space<vmem>>, vector<1x1x384xf32>
      %373 = vector.shape_cast %372 : vector<1x1x384xf32> to vector<1x384xf32>
      %374 = vector.shape_cast %371 : vector<1x384xf32> to vector<1x1x384xf32>
      tpu.vector_store %arg4[%c0_303, %c12_304, %c0_305], %374 {strides = array<i32>} : memref<1x25x384xf32, #tpu.memory_space<vmem>>, vector<1x1x384xf32>,
      %c13_306 = arith.constant 13 : index
      %c0_307 = arith.constant 0 : index
      %c0_308 = arith.constant 0 : index
      %375 = vector.load %arg5[%c13_306, %c0_307, %c0_308] : memref<25x8x384xf32, #tpu.memory_space<vmem>>, vector<1x8x384xf32>
      %376 = vector.shape_cast %375 : vector<1x8x384xf32> to vector<8x384xf32>
      %cst_309 = arith.constant dense<0.000000e+00> : vector<384xf32>
      %377 = vector.multi_reduction <add>, %376, %cst_309 [0] : vector<8x384xf32> to vector<384xf32>
      %378 = vector.shape_cast %377 : vector<384xf32> to vector<1x384xf32>
      %c0_310 = arith.constant 0 : index
      %c13_311 = arith.constant 13 : index
      %c0_312 = arith.constant 0 : index
      %379 = vector.load %arg4[%c0_310, %c13_311, %c0_312] : memref<1x25x384xf32, #tpu.memory_space<vmem>>, vector<1x1x384xf32>
      %380 = vector.shape_cast %379 : vector<1x1x384xf32> to vector<1x384xf32>
      %381 = vector.shape_cast %378 : vector<1x384xf32> to vector<1x1x384xf32>
      tpu.vector_store %arg4[%c0_310, %c13_311, %c0_312], %381 {strides = array<i32>} : memref<1x25x384xf32, #tpu.memory_space<vmem>>, vector<1x1x384xf32>,
      %c14_313 = arith.constant 14 : index
      %c0_314 = arith.constant 0 : index
      %c0_315 = arith.constant 0 : index
      %382 = vector.load %arg5[%c14_313, %c0_314, %c0_315] : memref<25x8x384xf32, #tpu.memory_space<vmem>>, vector<1x8x384xf32>
      %383 = vector.shape_cast %382 : vector<1x8x384xf32> to vector<8x384xf32>
      %cst_316 = arith.constant dense<0.000000e+00> : vector<384xf32>
      %384 = vector.multi_reduction <add>, %383, %cst_316 [0] : vector<8x384xf32> to vector<384xf32>
      %385 = vector.shape_cast %384 : vector<384xf32> to vector<1x384xf32>
      %c0_317 = arith.constant 0 : index
      %c14_318 = arith.constant 14 : index
      %c0_319 = arith.constant 0 : index
      %386 = vector.load %arg4[%c0_317, %c14_318, %c0_319] : memref<1x25x384xf32, #tpu.memory_space<vmem>>, vector<1x1x384xf32>
      %387 = vector.shape_cast %386 : vector<1x1x384xf32> to vector<1x384xf32>
      %388 = vector.shape_cast %385 : vector<1x384xf32> to vector<1x1x384xf32>
      tpu.vector_store %arg4[%c0_317, %c14_318, %c0_319], %388 {strides = array<i32>} : memref<1x25x384xf32, #tpu.memory_space<vmem>>, vector<1x1x384xf32>,
      %c15_320 = arith.constant 15 : index
      %c0_321 = arith.constant 0 : index
      %c0_322 = arith.constant 0 : index
      %389 = vector.load %arg5[%c15_320, %c0_321, %c0_322] : memref<25x8x384xf32, #tpu.memory_space<vmem>>, vector<1x8x384xf32>
      %390 = vector.shape_cast %389 : vector<1x8x384xf32> to vector<8x384xf32>
      %cst_323 = arith.constant dense<0.000000e+00> : vector<384xf32>
      %391 = vector.multi_reduction <add>, %390, %cst_323 [0] : vector<8x384xf32> to vector<384xf32>
      %392 = vector.shape_cast %391 : vector<384xf32> to vector<1x384xf32>
      %c0_324 = arith.constant 0 : index
      %c15_325 = arith.constant 15 : index
      %c0_326 = arith.constant 0 : index
      %393 = vector.load %arg4[%c0_324, %c15_325, %c0_326] : memref<1x25x384xf32, #tpu.memory_space<vmem>>, vector<1x1x384xf32>
      %394 = vector.shape_cast %393 : vector<1x1x384xf32> to vector<1x384xf32>
      %395 = vector.shape_cast %392 : vector<1x384xf32> to vector<1x1x384xf32>
      tpu.vector_store %arg4[%c0_324, %c15_325, %c0_326], %395 {strides = array<i32>} : memref<1x25x384xf32, #tpu.memory_space<vmem>>, vector<1x1x384xf32>,
      %c16_327 = arith.constant 16 : index
      %c0_328 = arith.constant 0 : index
      %c0_329 = arith.constant 0 : index
      %396 = vector.load %arg5[%c16_327, %c0_328, %c0_329] : memref<25x8x384xf32, #tpu.memory_space<vmem>>, vector<1x8x384xf32>
      %397 = vector.shape_cast %396 : vector<1x8x384xf32> to vector<8x384xf32>
      %cst_330 = arith.constant dense<0.000000e+00> : vector<384xf32>
      %398 = vector.multi_reduction <add>, %397, %cst_330 [0] : vector<8x384xf32> to vector<384xf32>
      %399 = vector.shape_cast %398 : vector<384xf32> to vector<1x384xf32>
      %c0_331 = arith.constant 0 : index
      %c16_332 = arith.constant 16 : index
      %c0_333 = arith.constant 0 : index
      %400 = vector.load %arg4[%c0_331, %c16_332, %c0_333] : memref<1x25x384xf32, #tpu.memory_space<vmem>>, vector<1x1x384xf32>
      %401 = vector.shape_cast %400 : vector<1x1x384xf32> to vector<1x384xf32>
      %402 = vector.shape_cast %399 : vector<1x384xf32> to vector<1x1x384xf32>
      tpu.vector_store %arg4[%c0_331, %c16_332, %c0_333], %402 {strides = array<i32>} : memref<1x25x384xf32, #tpu.memory_space<vmem>>, vector<1x1x384xf32>,
      %c17_334 = arith.constant 17 : index
      %c0_335 = arith.constant 0 : index
      %c0_336 = arith.constant 0 : index
      %403 = vector.load %arg5[%c17_334, %c0_335, %c0_336] : memref<25x8x384xf32, #tpu.memory_space<vmem>>, vector<1x8x384xf32>
      %404 = vector.shape_cast %403 : vector<1x8x384xf32> to vector<8x384xf32>
      %cst_337 = arith.constant dense<0.000000e+00> : vector<384xf32>
      %405 = vector.multi_reduction <add>, %404, %cst_337 [0] : vector<8x384xf32> to vector<384xf32>
      %406 = vector.shape_cast %405 : vector<384xf32> to vector<1x384xf32>
      %c0_338 = arith.constant 0 : index
      %c17_339 = arith.constant 17 : index
      %c0_340 = arith.constant 0 : index
      %407 = vector.load %arg4[%c0_338, %c17_339, %c0_340] : memref<1x25x384xf32, #tpu.memory_space<vmem>>, vector<1x1x384xf32>
      %408 = vector.shape_cast %407 : vector<1x1x384xf32> to vector<1x384xf32>
      %409 = vector.shape_cast %406 : vector<1x384xf32> to vector<1x1x384xf32>
      tpu.vector_store %arg4[%c0_338, %c17_339, %c0_340], %409 {strides = array<i32>} : memref<1x25x384xf32, #tpu.memory_space<vmem>>, vector<1x1x384xf32>,
      %c18_341 = arith.constant 18 : index
      %c0_342 = arith.constant 0 : index
      %c0_343 = arith.constant 0 : index
      %410 = vector.load %arg5[%c18_341, %c0_342, %c0_343] : memref<25x8x384xf32, #tpu.memory_space<vmem>>, vector<1x8x384xf32>
      %411 = vector.shape_cast %410 : vector<1x8x384xf32> to vector<8x384xf32>
      %cst_344 = arith.constant dense<0.000000e+00> : vector<384xf32>
      %412 = vector.multi_reduction <add>, %411, %cst_344 [0] : vector<8x384xf32> to vector<384xf32>
      %413 = vector.shape_cast %412 : vector<384xf32> to vector<1x384xf32>
      %c0_345 = arith.constant 0 : index
      %c18_346 = arith.constant 18 : index
      %c0_347 = arith.constant 0 : index
      %414 = vector.load %arg4[%c0_345, %c18_346, %c0_347] : memref<1x25x384xf32, #tpu.memory_space<vmem>>, vector<1x1x384xf32>
      %415 = vector.shape_cast %414 : vector<1x1x384xf32> to vector<1x384xf32>
      %416 = vector.shape_cast %413 : vector<1x384xf32> to vector<1x1x384xf32>
      tpu.vector_store %arg4[%c0_345, %c18_346, %c0_347], %416 {strides = array<i32>} : memref<1x25x384xf32, #tpu.memory_space<vmem>>, vector<1x1x384xf32>,
      %c19_348 = arith.constant 19 : index
      %c0_349 = arith.constant 0 : index
      %c0_350 = arith.constant 0 : index
      %417 = vector.load %arg5[%c19_348, %c0_349, %c0_350] : memref<25x8x384xf32, #tpu.memory_space<vmem>>, vector<1x8x384xf32>
      %418 = vector.shape_cast %417 : vector<1x8x384xf32> to vector<8x384xf32>
      %cst_351 = arith.constant dense<0.000000e+00> : vector<384xf32>
      %419 = vector.multi_reduction <add>, %418, %cst_351 [0] : vector<8x384xf32> to vector<384xf32>
      %420 = vector.shape_cast %419 : vector<384xf32> to vector<1x384xf32>
      %c0_352 = arith.constant 0 : index
      %c19_353 = arith.constant 19 : index
      %c0_354 = arith.constant 0 : index
      %421 = vector.load %arg4[%c0_352, %c19_353, %c0_354] : memref<1x25x384xf32, #tpu.memory_space<vmem>>, vector<1x1x384xf32>
      %422 = vector.shape_cast %421 : vector<1x1x384xf32> to vector<1x384xf32>
      %423 = vector.shape_cast %420 : vector<1x384xf32> to vector<1x1x384xf32>
      tpu.vector_store %arg4[%c0_352, %c19_353, %c0_354], %423 {strides = array<i32>} : memref<1x25x384xf32, #tpu.memory_space<vmem>>, vector<1x1x384xf32>,
      %c20_355 = arith.constant 20 : index
      %c0_356 = arith.constant 0 : index
      %c0_357 = arith.constant 0 : index
      %424 = vector.load %arg5[%c20_355, %c0_356, %c0_357] : memref<25x8x384xf32, #tpu.memory_space<vmem>>, vector<1x8x384xf32>
      %425 = vector.shape_cast %424 : vector<1x8x384xf32> to vector<8x384xf32>
      %cst_358 = arith.constant dense<0.000000e+00> : vector<384xf32>
      %426 = vector.multi_reduction <add>, %425, %cst_358 [0] : vector<8x384xf32> to vector<384xf32>
      %427 = vector.shape_cast %426 : vector<384xf32> to vector<1x384xf32>
      %c0_359 = arith.constant 0 : index
      %c20_360 = arith.constant 20 : index
      %c0_361 = arith.constant 0 : index
      %428 = vector.load %arg4[%c0_359, %c20_360, %c0_361] : memref<1x25x384xf32, #tpu.memory_space<vmem>>, vector<1x1x384xf32>
      %429 = vector.shape_cast %428 : vector<1x1x384xf32> to vector<1x384xf32>
      %430 = vector.shape_cast %427 : vector<1x384xf32> to vector<1x1x384xf32>
      tpu.vector_store %arg4[%c0_359, %c20_360, %c0_361], %430 {strides = array<i32>} : memref<1x25x384xf32, #tpu.memory_space<vmem>>, vector<1x1x384xf32>,
      %c21_362 = arith.constant 21 : index
      %c0_363 = arith.constant 0 : index
      %c0_364 = arith.constant 0 : index
      %431 = vector.load %arg5[%c21_362, %c0_363, %c0_364] : memref<25x8x384xf32, #tpu.memory_space<vmem>>, vector<1x8x384xf32>
      %432 = vector.shape_cast %431 : vector<1x8x384xf32> to vector<8x384xf32>
      %cst_365 = arith.constant dense<0.000000e+00> : vector<384xf32>
      %433 = vector.multi_reduction <add>, %432, %cst_365 [0] : vector<8x384xf32> to vector<384xf32>
      %434 = vector.shape_cast %433 : vector<384xf32> to vector<1x384xf32>
      %c0_366 = arith.constant 0 : index
      %c21_367 = arith.constant 21 : index
      %c0_368 = arith.constant 0 : index
      %435 = vector.load %arg4[%c0_366, %c21_367, %c0_368] : memref<1x25x384xf32, #tpu.memory_space<vmem>>, vector<1x1x384xf32>
      %436 = vector.shape_cast %435 : vector<1x1x384xf32> to vector<1x384xf32>
      %437 = vector.shape_cast %434 : vector<1x384xf32> to vector<1x1x384xf32>
      tpu.vector_store %arg4[%c0_366, %c21_367, %c0_368], %437 {strides = array<i32>} : memref<1x25x384xf32, #tpu.memory_space<vmem>>, vector<1x1x384xf32>,
      %c22_369 = arith.constant 22 : index
      %c0_370 = arith.constant 0 : index
      %c0_371 = arith.constant 0 : index
      %438 = vector.load %arg5[%c22_369, %c0_370, %c0_371] : memref<25x8x384xf32, #tpu.memory_space<vmem>>, vector<1x8x384xf32>
      %439 = vector.shape_cast %438 : vector<1x8x384xf32> to vector<8x384xf32>
      %cst_372 = arith.constant dense<0.000000e+00> : vector<384xf32>
      %440 = vector.multi_reduction <add>, %439, %cst_372 [0] : vector<8x384xf32> to vector<384xf32>
      %441 = vector.shape_cast %440 : vector<384xf32> to vector<1x384xf32>
      %c0_373 = arith.constant 0 : index
      %c22_374 = arith.constant 22 : index
      %c0_375 = arith.constant 0 : index
      %442 = vector.load %arg4[%c0_373, %c22_374, %c0_375] : memref<1x25x384xf32, #tpu.memory_space<vmem>>, vector<1x1x384xf32>
      %443 = vector.shape_cast %442 : vector<1x1x384xf32> to vector<1x384xf32>
      %444 = vector.shape_cast %441 : vector<1x384xf32> to vector<1x1x384xf32>
      tpu.vector_store %arg4[%c0_373, %c22_374, %c0_375], %444 {strides = array<i32>} : memref<1x25x384xf32, #tpu.memory_space<vmem>>, vector<1x1x384xf32>,
      %c23_376 = arith.constant 23 : index
      %c0_377 = arith.constant 0 : index
      %c0_378 = arith.constant 0 : index
      %445 = vector.load %arg5[%c23_376, %c0_377, %c0_378] : memref<25x8x384xf32, #tpu.memory_space<vmem>>, vector<1x8x384xf32>
      %446 = vector.shape_cast %445 : vector<1x8x384xf32> to vector<8x384xf32>
      %cst_379 = arith.constant dense<0.000000e+00> : vector<384xf32>
      %447 = vector.multi_reduction <add>, %446, %cst_379 [0] : vector<8x384xf32> to vector<384xf32>
      %448 = vector.shape_cast %447 : vector<384xf32> to vector<1x384xf32>
      %c0_380 = arith.constant 0 : index
      %c23_381 = arith.constant 23 : index
      %c0_382 = arith.constant 0 : index
      %449 = vector.load %arg4[%c0_380, %c23_381, %c0_382] : memref<1x25x384xf32, #tpu.memory_space<vmem>>, vector<1x1x384xf32>
      %450 = vector.shape_cast %449 : vector<1x1x384xf32> to vector<1x384xf32>
      %451 = vector.shape_cast %448 : vector<1x384xf32> to vector<1x1x384xf32>
      tpu.vector_store %arg4[%c0_380, %c23_381, %c0_382], %451 {strides = array<i32>} : memref<1x25x384xf32, #tpu.memory_space<vmem>>, vector<1x1x384xf32>,
      %c24_383 = arith.constant 24 : index
      %c0_384 = arith.constant 0 : index
      %c0_385 = arith.constant 0 : index
      %452 = vector.load %arg5[%c24_383, %c0_384, %c0_385] : memref<25x8x384xf32, #tpu.memory_space<vmem>>, vector<1x8x384xf32>
      %453 = vector.shape_cast %452 : vector<1x8x384xf32> to vector<8x384xf32>
      %cst_386 = arith.constant dense<0.000000e+00> : vector<384xf32>
      %454 = vector.multi_reduction <add>, %453, %cst_386 [0] : vector<8x384xf32> to vector<384xf32>
      %455 = vector.shape_cast %454 : vector<384xf32> to vector<1x384xf32>
      %c0_387 = arith.constant 0 : index
      %c24_388 = arith.constant 24 : index
      %c0_389 = arith.constant 0 : index
      %456 = vector.load %arg4[%c0_387, %c24_388, %c0_389] : memref<1x25x384xf32, #tpu.memory_space<vmem>>, vector<1x1x384xf32>
      %457 = vector.shape_cast %456 : vector<1x1x384xf32> to vector<1x384xf32>
      %458 = vector.shape_cast %455 : vector<1x384xf32> to vector<1x1x384xf32>
      tpu.vector_store %arg4[%c0_387, %c24_388, %c0_389], %458 {strides = array<i32>} : memref<1x25x384xf32, #tpu.memory_space<vmem>>, vector<1x1x384xf32>,
    } else {
    }
    return
  }
  func.func @transform_0(%arg0: i32, %arg1: i32) -> (i32, i32, i32) {
    %c0_i32 = arith.constant 0 : i32
    %c0_i32_0 = arith.constant 0 : i32
    return %arg0, %arg1, %c0_i32 : i32, i32, i32
  }
  func.func @transform_1(%arg0: i32, %arg1: i32) -> (i32, i32, i32) {
    %c0_i32 = arith.constant 0 : i32
    %c0_i32_0 = arith.constant 0 : i32
    return %arg0, %arg1, %c0_i32 : i32, i32, i32
  }
  func.func @transform_2(%arg0: i32, %arg1: i32) -> (i32, i32, i32) {
    %c0_i32 = arith.constant 0 : i32
    %c0_i32_0 = arith.constant 0 : i32
    %c0_i32_1 = arith.constant 0 : i32
    return %arg0, %c0_i32, %c0_i32_0 : i32, i32, i32
  }
}

</mosaic_0001>

<bundles_post_ra>
// kernel: cost_volume_forward.1
= control target key start
LH: loop header
LB: loop body
LE: loop exit
PB: predicated region body
PF: predicated region fallthrough
CT: control target
= control target key end

     0   :  { %s2768_s9 = smov 0   ;;  %s2770_s10 = smov 0   ;;  %s3389_s0 = inlined_call_operand.vmem [shape: f32[2,8,384], index: 0, kind: input, shape index: {}]   ;;  %s3390_s1 = inlined_call_operand.vmem [shape: f32[2,8,512], index: 1, kind: input, shape index: {}]   ;;  %s3391_s2 = inlined_call_operand.vmem [shape: f32[2,25,384], index: 2, kind: output, shape index: {}]  }
   0x1   :  { %s2772_s11 = smov 0  }
   0x2 LB: > { %s24_s12 = sadd.s32 1, %s2722_s10  ;;  %p2618_p0 = scmp.ge.s32.totalorder %s2726_s11, 1  ;;  %s2726_s11 = sphi %s2772_s11, %s12_s11   ;;  %s2722_s10 = sphi %s2770_s10, %s3395_s10   ;;  %s2718_s9 = sphi %s2768_s9, %s3394_s9  }
   0x3   : > { %p26_p1 = scmp.ge.s32.totalorder %s24_s12, 2  ;;  %p146_p2 = scmp.lt.s32.totalorder %s2726_s11, 3 }
   0x5   : > { %s3397_s12 = smov (%p26_p1, %s24_s12), 0  ;;  %p147_p3 = pnand %p2618_p0, %p146_p2 }
   0x6   : > { %p181_p4 = scmp.lt.s32.totalorder (!%p147_p3), %s2718_s9, 1  ;;  %s2728_s17 = smov (!%p147_p3), 127   ;;  %v1271_v13 = vlaneseq (!%p147_p3)  ;;  %v2730_v14 = vmov (!%p147_p3), 1966171168   ;;  %vm320_vm1 = vcmask (!%p147_p3), 1039360   ;;  %vm359_vm2 = vcmask (!%p147_p3), 1031168  }
   0x7   : > { %150 = sbr.rel (%p147_p3) target bundleno = 350 (0x15e), region = 28  ;;  %s2729_s22 = smov (!%p147_p3), 126   ;;  %v1269_v15 = vunpack.c.l.s4 (!%p147_p3), %v2730_v14  ;;  %vm398_vm3 = vcmask (!%p147_p3), 1022976   ;;  %vm437_vm4 = vcmask (!%p147_p3), 1014784   ;;  %vm476_vm5 = vcmask (!%p147_p3), 883712  }
   0x8   : > { %v1272_v22 = vshrl.u32 (!%p147_p3), %v1271_v13, 7  ;;  %s2731_s23 = smov (!%p147_p3), 125   ;;  %s2732_s24 = smov (!%p147_p3), 124   ;;  %vm2854_vm0 = vcmp.lt.s32.totalorder (!%p147_p3), %v1271_v13, 384  ;;  %vm515_vm6 = vcmask (!%p147_p3), 875520   ;;  %vm554_vm7 = vcmask (!%p147_p3), 867328  }
   0x9   : > { %v1270_v23 = vunpack.c.0.s8 (!%p147_p3), %v1269_v15  ;;  %s2733_s29 = smov (!%p147_p3), 108   ;;  %s2734_s30 = smov (!%p147_p3), 107   ;;  %vm593_vm8 = vcmask (!%p147_p3), 859136   ;;  %vm632_vm9 = vcmask (!%p147_p3), 850944   ;;  %vm671_vm10 = vcmask (!%p147_p3), 719872  }
   0xa   : > { %s2735_s3 = smov (!%p147_p3), 106   ;;  %s2736_s4 = smov (!%p147_p3), 105   ;;  %vm710_vm11 = vcmask (!%p147_p3), 711680   ;;  %vm749_vm12 = vcmask (!%p147_p3), 703488   ;;  %vm788_vm13 = vcmask (!%p147_p3), 695296   ;;  %vm827_vm14 = vcmask (!%p147_p3), 687104  }
   0xb   : > { %v2837_v30 = vsub.s32 (!%p147_p3), %v1270_v23, %v1272_v22  ;;  %s2737_s5 = smov (!%p147_p3), 104   ;;  %s2738_s6 = smov (!%p147_p3), 88   ;;  %vm866_vm15 = vcmask (!%p147_p3), 556032  }
   0xc   : > { %s2739_s7 = smov (!%p147_p3), 87   ;;  %s2740_s8 = smov (!%p147_p3), 86  }
   0xd   : > { %s2743_s14 = smov (!%p147_p3), 68   ;;  %s2744_s15 = smov (!%p147_p3), 67  }
   0xe   : > { %s3399_s9 = smov (!%p181_p4, %s2718_s9), 1  ;;  %s2747_s19 = smov 64  }
   0xf   : > { %s2649_s13 = sshll.u32 %s3399_s9, 5  ;;  %s2650_s18 = smul.u32 24, %s3399_s9 }
  0x10   : > { %s2792_s16 = scalar_lea.vmem %s3390_s1, %s2649_s13  ;;  %s2651_s25 = smul.u32 96, %s3399_s9 }
  0x11   : > { %v2795_v0 = vld [vmem:[%s2792_s16 + $0x10] sm:$0xff]  ;;  %v2798_v1 = vld [vmem:[%s2792_s16] sm:$0xff]  ;;  %v2803_v2 = vld [vmem:[%s2792_s16 + $0x18] sm:$0xff]  ;;  %s2814_s21 = scalar_lea.vmem %s3389_s0, %s2650_s18  ;;  %s2741_s9 = smov 85  }
  0x12   : > { %316 = vrot.lane.b32.xlu1 %v2795_v0, %s2728_s17  ;;  %312 = vrot.lane.b32.xlu0 %v2798_v1, %s2728_s17  ;;  %v2806_v3 = vld [vmem:[%s2792_s16 + $0x8] sm:$0xff]  ;;  %v2817_v4 = vld [vmem:[%s2814_s21 + $0x10] sm:$0xff]  ;;  %s2852_s28 = scalar_lea.vmem %s3391_s2, %s2651_s25  ;;  %s2742_s13 = smov 84  }
  0x13   : > { %v2820_v5 = vld [vmem:[%s2814_s21] sm:$0xff]  ;;  %v2823_v6 = vld [vmem:[%s2814_s21 + $0x8] sm:$0xff]  ;;  %v291_v7 = vmul.f32 %v2795_v0, %v2817_v4  ;;  %s2746_s18 = smov 65   ;;  %s2748_s20 = smov 48  }
  0x14   : > { %v289_v8 = vmul.f32 %v2798_v1, %v2820_v5  ;;  %v290_v9 = vmul.f32 %v2806_v3, %v2823_v6  ;;  %s2752_s25 = smov 44  }
  0x15   : > { %v1258_v10 = vrot.slane %v291_v7, 4 }
  0x16   : > { %318 = vrot.lane.b32.xlu1 %v2803_v2, %s2728_s17  ;;  %314 = vrot.lane.b32.xlu0 %v2806_v3, %s2728_s17  ;;  %v1246_v11 = vrot.slane %v289_v8, 4  ;;  %v1252_v12 = vrot.slane %v290_v9, 4  ;;  %s2745_s17 = smov 66  }
  0x17   : > { %v1259_v16 = vadd.f32 %v1258_v10, %v291_v7 }
  0x18   : > { %v1247_v17 = vadd.f32 %v1246_v11, %v289_v8  ;;  %v1253_v18 = vadd.f32 %v1252_v12, %v290_v9 }
  0x19   : > { %v1260_v19 = vrot.slane %v1259_v16, 2 }
  0x1a   : > { %353 = vrot.lane.b32.xlu1 %v2806_v3, %s2729_s22  ;;  %351 = vrot.lane.b32.xlu0 %v2798_v1, %s2729_s22  ;;  %v1248_v20 = vrot.slane %v1247_v17, 2  ;;  %v1254_v21 = vrot.slane %v1253_v18, 2 }
  0x1b   : > { %v1261_v24 = vadd.f32 %v1260_v19, %v1259_v16 }
  0x1c   : > { %v1249_v25 = vadd.f32 %v1248_v20, %v1247_v17  ;;  %v1255_v26 = vadd.f32 %v1254_v21, %v1253_v18 }
  0x1d   : > { %v1262_v27 = vrot.slane %v1261_v24, 1 }
  0x1e   : > { %357 = vrot.lane.b32.xlu1 %v2803_v2, %s2729_s22  ;;  %355 = vrot.lane.b32.xlu0 %v2795_v0, %s2729_s22  ;;  %v1250_v28 = vrot.slane %v1249_v25, 1  ;;  %v1256_v29 = vrot.slane %v1255_v26, 1  ;;  %s2749_s22 = smov 47  }
  0x1f   : > { %v1263_v31 = vadd.f32 %v1262_v27, %v1261_v24 }
  0x20   : > { %v1251_v32 = vadd.f32 %v1250_v28, %v1249_v25  ;;  %v1257_v33 = vadd.f32 %v1256_v29, %v1255_v26 }
  0x21   : > { %v1281_v34 = vrot.slane %v1263_v31, %v2837_v30 }
  0x22   : > { %392 = vrot.lane.b32.xlu1 %v2806_v3, %s2731_s23  ;;  %390 = vrot.lane.b32.xlu0 %v2798_v1, %s2731_s23  ;;  %v1267_v35 = vcombine.low %v1251_v32, %v1257_v33 }
  0x24   : > { %v1274_v36 = vrot.slane %v1267_v35, %v2837_v30 }
  0x26   : > { %396 = vrot.lane.b32.xlu1 %v2803_v2, %s2731_s23  ;;  %394 = vrot.lane.b32.xlu0 %v2795_v0, %s2731_s23  ;;  %v1282_v37 = vcombine.low %v1274_v36, %v1281_v34  ;;  %s2750_s23 = smov 46  }
  0x28   : > { %v1289_v38 = vrot.slane %v1282_v37, %v2837_v30 }
  0x2a   : > { %431 = vrot.lane.b32.xlu1 %v2806_v3, %s2732_s24  ;;  %429 = vrot.lane.b32.xlu0 %v2798_v1, %s2732_s24  ;;  %1295 = vst.msk [vmem:[%s2852_s28] ss:$8 sm:$0x7] %vm2854_vm0, %v1289_v38 }
  0x2e   : > { %435 = vrot.lane.b32.xlu1 %v2803_v2, %s2732_s24  ;;  %433 = vrot.lane.b32.xlu0 %v2795_v0, %s2732_s24  ;;  %s2751_s24 = smov 45  }
  0x32   : > { %470 = vrot.lane.b32.xlu1 %v2806_v3, %s2733_s29  ;;  %468 = vrot.lane.b32.xlu0 %v2798_v1, %s2733_s29 }
  0x36   : > { %474 = vrot.lane.b32.xlu1 %v2803_v2, %s2733_s29  ;;  %472 = vrot.lane.b32.xlu0 %v2795_v0, %s2733_s29 }
  0x3a   : > { %509 = vrot.lane.b32.xlu1 %v2806_v3, %s2734_s30  ;;  %507 = vrot.lane.b32.xlu0 %v2798_v1, %s2734_s30 }
  0x3e   : > { %513 = vrot.lane.b32.xlu1 %v2803_v2, %s2734_s30  ;;  %511 = vrot.lane.b32.xlu0 %v2795_v0, %s2734_s30 }
  0x42   : > { %548 = vrot.lane.b32.xlu1 %v2806_v3, %s2735_s3  ;;  %546 = vrot.lane.b32.xlu0 %v2798_v1, %s2735_s3 }
  0x46   : > { %552 = vrot.lane.b32.xlu1 %v2803_v2, %s2735_s3  ;;  %550 = vrot.lane.b32.xlu0 %v2795_v0, %s2735_s3 }
  0x4a   : > { %587 = vrot.lane.b32.xlu1 %v2806_v3, %s2736_s4  ;;  %585 = vrot.lane.b32.xlu0 %v2798_v1, %s2736_s4 }
  0x4e   : > { %591 = vrot.lane.b32.xlu1 %v2803_v2, %s2736_s4  ;;  %589 = vrot.lane.b32.xlu0 %v2795_v0, %s2736_s4 }
  0x52   : > { %626 = vrot.lane.b32.xlu1 %v2806_v3, %s2737_s5  ;;  %624 = vrot.lane.b32.xlu0 %v2798_v1, %s2737_s5 }
  0x56   : > { %630 = vrot.lane.b32.xlu1 %v2803_v2, %s2737_s5  ;;  %628 = vrot.lane.b32.xlu0 %v2795_v0, %s2737_s5 }
  0x5a   : > { %665 = vrot.lane.b32.xlu1 %v2806_v3, %s2738_s6  ;;  %663 = vrot.lane.b32.xlu0 %v2798_v1, %s2738_s6 }
  0x5e   : > { %669 = vrot.lane.b32.xlu1 %v2803_v2, %s2738_s6  ;;  %667 = vrot.lane.b32.xlu0 %v2795_v0, %s2738_s6 }
  0x62   : > { %704 = vrot.lane.b32.xlu1 %v2806_v3, %s2739_s7  ;;  %702 = vrot.lane.b32.xlu0 %v2798_v1, %s2739_s7 }
  0x66   : > { %708 = vrot.lane.b32.xlu1 %v2803_v2, %s2739_s7  ;;  %706 = vrot.lane.b32.xlu0 %v2795_v0, %s2739_s7 }
  0x6a   : > { %743 = vrot.lane.b32.xlu1 %v2806_v3, %s2740_s8  ;;  %741 = vrot.lane.b32.xlu0 %v2798_v1, %s2740_s8 }
  0x6e   : > { %747 = vrot.lane.b32.xlu1 %v2803_v2, %s2740_s8  ;;  %745 = vrot.lane.b32.xlu0 %v2795_v0, %s2740_s8 }
  0x72   : > { %782 = vrot.lane.b32.xlu1 %v2806_v3, %s2741_s9  ;;  %780 = vrot.lane.b32.xlu0 %v2798_v1, %s2741_s9 }
  0x76   : > { %786 = vrot.lane.b32.xlu1 %v2803_v2, %s2741_s9  ;;  %784 = vrot.lane.b32.xlu0 %v2795_v0, %s2741_s9 }
  0x7a   : > { %821 = vrot.lane.b32.xlu1 %v2806_v3, %s2742_s13  ;;  %819 = vrot.lane.b32.xlu0 %v2798_v1, %s2742_s13 }
  0x7e   : > { %825 = vrot.lane.b32.xlu1 %v2803_v2, %s2742_s13  ;;  %823 = vrot.lane.b32.xlu0 %v2795_v0, %s2742_s13 }
  0x82   : > { %860 = vrot.lane.b32.xlu1 %v2806_v3, %s2743_s14  ;;  %858 = vrot.lane.b32.xlu0 %v2798_v1, %s2743_s14 }
  0x84   : > { %v317_v40 = vpop.permute.xlu1 %316  ;;  %v313_v41 = vpop.permute.xlu0 %312 }
  0x86   : > { %897 = vrot.lane.b32.xlu1 %v2798_v1, %s2744_s15  ;;  %862 = vrot.lane.b32.xlu0 %v2795_v0, %s2743_s14 }
  0x88   : > { %v319_v42 = vpop.permute.xlu1 %318  ;;  %v315_v43 = vpop.permute.xlu0 %314 }
  0x89   : > { %v323_v44 = vsel %vm320_vm1, %v317_v40, %v319_v42  ;;  %v321_v45 = vsel %vm320_vm1, %v313_v41, %v315_v43  ;;  %v322_v46 = vsel %vm320_vm1, %v315_v43, %v317_v40  ;;  %vm905_vm1 = vcmask 547840  }
  0x8a   : > { %v329_v47 = vmul.f32 %v323_v44, %v2817_v4  ;;  %v327_v48 = vmul.f32 %v321_v45, %v2820_v5  ;;  %v328_v49 = vmul.f32 %v322_v46, %v2823_v6  ;;  %901 = vrot.lane.b32.xlu1 %v2795_v0, %s2744_s15  ;;  %899 = vrot.lane.b32.xlu0 %v2806_v3, %s2744_s15 }
  0x8c   : > { %v1312_v50 = vrot.slane %v329_v47, 4  ;;  %v1300_v51 = vrot.slane %v327_v48, 4  ;;  %v1306_v52 = vrot.slane %v328_v49, 4  ;;  %v354_v53 = vpop.permute.xlu1 %353  ;;  %v352_v54 = vpop.permute.xlu0 %351 }
  0x8d   : > { %v360_v55 = vsel %vm359_vm2, %v352_v54, %v354_v53 }
  0x8e   : > { %v1313_v56 = vadd.f32 %v1312_v50, %v329_v47  ;;  %v1301_v57 = vadd.f32 %v1300_v51, %v327_v48  ;;  %v1307_v58 = vadd.f32 %v1306_v52, %v328_v49  ;;  %v366_v59 = vmul.f32 %v360_v55, %v2820_v5  ;;  %938 = vrot.lane.b32.xlu1 %v2806_v3, %s2745_s17 }
  0x8f   : > { %936 = vrot.lane.b32.xlu0 %v2798_v1, %s2745_s17 }
  0x90   : > { %v1314_v60 = vrot.slane %v1313_v56, 2  ;;  %v1302_v61 = vrot.slane %v1301_v57, 2  ;;  %v1308_v62 = vrot.slane %v1307_v58, 2  ;;  %v1351_v63 = vrot.slane %v366_v59, 4  ;;  %v358_v7 = vpop.permute.xlu1 %357  ;;  %v356_v8 = vpop.permute.xlu0 %355 }
  0x91   : > { %v361_v9 = vsel %vm359_vm2, %v354_v53, %v356_v8  ;;  %v362_v10 = vsel %vm359_vm2, %v356_v8, %v358_v7  ;;  %vm944_vm2 = vcmask 539648  }
  0x92   : > { %v1315_v11 = vadd.f32 %v1314_v60, %v1313_v56  ;;  %v1303_v12 = vadd.f32 %v1302_v61, %v1301_v57  ;;  %v1309_v13 = vadd.f32 %v1308_v62, %v1307_v58  ;;  %v1352_v14 = vadd.f32 %v1351_v63, %v366_v59  ;;  %975 = vrot.lane.b32.xlu1 %v2798_v1, %s2746_s18 }
  0x93   : > { %v367_v15 = vmul.f32 %v361_v9, %v2823_v6  ;;  %v368_v16 = vmul.f32 %v362_v10, %v2817_v4  ;;  %940 = vrot.lane.b32.xlu0 %v2795_v0, %s2745_s17 }
  0x94   : > { %v1316_v17 = vrot.slane %v1315_v11, 1  ;;  %v1304_v18 = vrot.slane %v1303_v12, 1  ;;  %v1310_v19 = vrot.slane %v1309_v13, 1  ;;  %v1353_v20 = vrot.slane %v1352_v14, 2  ;;  %v393_v21 = vpop.permute.xlu1 %392  ;;  %v391_v22 = vpop.permute.xlu0 %390 }
  0x95   : > { %v1357_v23 = vrot.slane %v367_v15, 4  ;;  %v1363_v24 = vrot.slane %v368_v16, 4  ;;  %v399_v25 = vsel %vm398_vm3, %v391_v22, %v393_v21 }
  0x96   : > { %v1317_v26 = vadd.f32 %v1316_v17, %v1315_v11  ;;  %v1305_v27 = vadd.f32 %v1304_v18, %v1303_v12  ;;  %v1311_v28 = vadd.f32 %v1310_v19, %v1309_v13  ;;  %v1354_v29 = vadd.f32 %v1353_v20, %v1352_v14  ;;  %979 = vrot.lane.b32.xlu1 %v2795_v0, %s2746_s18 }
  0x97   : > { %v1358_v31 = vadd.f32 %v1357_v23, %v367_v15  ;;  %v1364_v32 = vadd.f32 %v1363_v24, %v368_v16  ;;  %v405_v33 = vmul.f32 %v399_v25, %v2820_v5  ;;  %977 = vrot.lane.b32.xlu0 %v2806_v3, %s2746_s18 }
  0x98   : > { %v1335_v34 = vrot.slane %v1317_v26, %v2837_v30  ;;  %v1321_v35 = vcombine.low %v1305_v27, %v1311_v28  ;;  %v397_v36 = vpop.permute.xlu1 %396  ;;  %v395_v37 = vpop.permute.xlu0 %394  ;;  %v1355_v44 = vrot.slane %v1354_v29, 1 }
  0x99   : > { %v1359_v38 = vrot.slane %v1358_v31, 2  ;;  %v1365_v40 = vrot.slane %v1364_v32, 2  ;;  %v1402_v41 = vrot.slane %v405_v33, 4  ;;  %v400_v42 = vsel %vm398_vm3, %v393_v21, %v395_v37 }
  0x9a   : > { %v1328_v43 = vrot.slane %v1321_v35, %v2837_v30  ;;  %v401_v45 = vsel %vm398_vm3, %v395_v37, %v397_v36  ;;  %v406_v46 = vmul.f32 %v400_v42, %v2823_v6  ;;  %1016 = vrot.lane.b32.xlu1 %v2806_v3, %s2747_s19  ;;  %v1356_v60 = vadd.f32 %v1355_v44, %v1354_v29 }
  0x9b   : > { %v1360_v47 = vadd.f32 %v1359_v38, %v1358_v31  ;;  %v1366_v48 = vadd.f32 %v1365_v40, %v1364_v32  ;;  %v1403_v49 = vadd.f32 %v1402_v41, %v405_v33  ;;  %v407_v50 = vmul.f32 %v401_v45, %v2817_v4  ;;  %1014 = vrot.lane.b32.xlu0 %v2798_v1, %s2747_s19 }
  0x9c   : > { %v1336_v51 = vcombine.low %v1328_v43, %v1335_v34  ;;  %v1408_v52 = vrot.slane %v406_v46, 4  ;;  %v432_v53 = vpop.permute.xlu1 %431  ;;  %v430_v54 = vpop.permute.xlu0 %429  ;;  %vm983_vm3 = vcmask 531456  }
  0x9d   : > { %v1361_v55 = vrot.slane %v1360_v47, 1  ;;  %v1367_v56 = vrot.slane %v1366_v48, 1  ;;  %v1404_v57 = vrot.slane %v1403_v49, 2  ;;  %v1414_v58 = vrot.slane %v407_v50, 4 }
  0x9e   : > { %v1343_v59 = vrot.slane %v1336_v51, %v2837_v30  ;;  %v1409_v61 = vadd.f32 %v1408_v52, %v406_v46  ;;  %v438_v62 = vsel %vm437_vm4, %v430_v54, %v432_v53  ;;  %1053 = vrot.lane.b32.xlu1 %v2798_v1, %s2748_s20 }
  0x9f   : > { %v1362_v63 = vadd.f32 %v1361_v55, %v1360_v47  ;;  %v1368_v7 = vadd.f32 %v1367_v56, %v1366_v48  ;;  %v1405_v8 = vadd.f32 %v1404_v57, %v1403_v49  ;;  %v1415_v9 = vadd.f32 %v1414_v58, %v407_v50  ;;  %1018 = vrot.lane.b32.xlu0 %v2795_v0, %s2747_s19 }
  0xa0   : > { %2623 = vst.msk [vmem:[%s2852_s28 + $0x1] ss:$8 sm:$0x7] %vm2854_vm0, %v1343_v59  ;;  %v1410_v10 = vrot.slane %v1409_v61, 2  ;;  %v444_v11 = vmul.f32 %v438_v62, %v2820_v5  ;;  %v436_v12 = vpop.permute.xlu1 %435  ;;  %v434_v13 = vpop.permute.xlu0 %433 }
  0xa1   : > { %v1372_v14 = vcombine.low %v1356_v60, %v1362_v63  ;;  %v1406_v15 = vrot.slane %v1405_v8, 1  ;;  %v1416_v16 = vrot.slane %v1415_v9, 2  ;;  %v439_v19 = vsel %vm437_vm4, %v432_v53, %v434_v13 }
  0xa2   : > { %v1411_v17 = vadd.f32 %v1410_v10, %v1409_v61  ;;  %v1453_v18 = vrot.slane %v444_v11, 4  ;;  %v440_v20 = vsel %vm437_vm4, %v434_v13, %v436_v12  ;;  %1057 = vrot.lane.b32.xlu1 %v2795_v0, %s2748_s20  ;;  %v1386_v22 = vrot.slane %v1368_v7, %v2837_v30 }
  0xa3   : > { %v1379_v21 = vrot.slane %v1372_v14, %v2837_v30  ;;  %v1417_v23 = vadd.f32 %v1416_v16, %v1415_v9  ;;  %v445_v24 = vmul.f32 %v439_v19, %v2823_v6  ;;  %1055 = vrot.lane.b32.xlu0 %v2806_v3, %s2748_s20  ;;  %v1407_v25 = vadd.f32 %v1406_v15, %v1405_v8 }
  0xa4   : > { %v1412_v26 = vrot.slane %v1411_v17, 1  ;;  %v1454_v27 = vadd.f32 %v1453_v18, %v444_v11  ;;  %v446_v28 = vmul.f32 %v440_v20, %v2817_v4  ;;  %v471_v29 = vpop.permute.xlu1 %470  ;;  %v469_v31 = vpop.permute.xlu0 %468  ;;  %vm1022_vm4 = vcmask 523264  }
  0xa5   : > { %v1387_v32 = vcombine.low %v1379_v21, %v1386_v22  ;;  %v1418_v33 = vrot.slane %v1417_v23, 1  ;;  %v1459_v34 = vrot.slane %v445_v24, 4  ;;  %v477_v35 = vsel %vm476_vm5, %v469_v31, %v471_v29 }
  0xa6   : > { %v1413_v36 = vadd.f32 %v1412_v26, %v1411_v17  ;;  %v1455_v37 = vrot.slane %v1454_v27, 2  ;;  %v1465_v38 = vrot.slane %v446_v28, 4  ;;  %v483_v40 = vmul.f32 %v477_v35, %v2820_v5  ;;  %1094 = vrot.lane.b32.xlu1 %v2806_v3, %s2749_s22 }
  0xa7   : > { %v1394_v41 = vrot.slane %v1387_v32, %v2837_v30  ;;  %v1419_v42 = vadd.f32 %v1418_v33, %v1417_v23  ;;  %v1460_v43 = vadd.f32 %v1459_v34, %v445_v24  ;;  %1092 = vrot.lane.b32.xlu0 %v2798_v1, %s2749_s22 }
  0xa8   : > { %v1423_v44 = vcombine.low %v1407_v25, %v1413_v36  ;;  %v1456_v45 = vadd.f32 %v1455_v37, %v1454_v27  ;;  %v1466_v46 = vadd.f32 %v1465_v38, %v446_v28  ;;  %v1504_v47 = vrot.slane %v483_v40, 4  ;;  %v475_v48 = vpop.permute.xlu1 %474  ;;  %v473_v49 = vpop.permute.xlu0 %472 }
  0xa9   : > { %2624 = vst.msk [vmem:[%s2852_s28 + $0x2] ss:$8 sm:$0x7] %vm2854_vm0, %v1394_v41  ;;  %v1461_v50 = vrot.slane %v1460_v43, 2  ;;  %v478_v51 = vsel %vm476_vm5, %v471_v29, %v473_v49  ;;  %v479_v52 = vsel %vm476_vm5, %v473_v49, %v475_v48  ;;  %v1437_v54 = vrot.slane %v1419_v42, %v2837_v30 }
  0xaa   : > { %v1430_v53 = vrot.slane %v1423_v44, %v2837_v30  ;;  %v1467_v55 = vrot.slane %v1466_v46, 2  ;;  %v1505_v56 = vadd.f32 %v1504_v47, %v483_v40  ;;  %1131 = vrot.lane.b32.xlu1 %v2798_v1, %s2750_s23  ;;  %v1457_v57 = vrot.slane %v1456_v45, 1 }
  0xab   : > { %v1462_v58 = vadd.f32 %v1461_v50, %v1460_v43  ;;  %v484_v59 = vmul.f32 %v478_v51, %v2823_v6  ;;  %v485_v60 = vmul.f32 %v479_v52, %v2817_v4  ;;  %1096 = vrot.lane.b32.xlu0 %v2795_v0, %s2749_s22  ;;  %vm1061_vm5 = vcmask 392192  }
  0xac   : > { %v1438_v61 = vcombine.low %v1430_v53, %v1437_v54  ;;  %v1468_v62 = vadd.f32 %v1467_v55, %v1466_v46  ;;  %v1506_v63 = vrot.slane %v1505_v56, 2  ;;  %v510_v7 = vpop.permute.xlu1 %509  ;;  %v508_v8 = vpop.permute.xlu0 %507  ;;  %v1458_v17 = vadd.f32 %v1457_v57, %v1456_v45 }
  0xad   : > { %v1463_v9 = vrot.slane %v1462_v58, 1  ;;  %v1510_v10 = vrot.slane %v484_v59, 4  ;;  %v1516_v11 = vrot.slane %v485_v60, 4  ;;  %v516_v12 = vsel %vm515_vm6, %v508_v8, %v510_v7 }
  0xae   : > { %v1445_v13 = vrot.slane %v1438_v61, %v2837_v30  ;;  %v1469_v14 = vrot.slane %v1468_v62, 1  ;;  %v1507_v15 = vadd.f32 %v1506_v63, %v1505_v56  ;;  %v522_v16 = vmul.f32 %v516_v12, %v2820_v5  ;;  %1135 = vrot.lane.b32.xlu1 %v2795_v0, %s2750_s23 }
  0xaf   : > { %v1464_v18 = vadd.f32 %v1463_v9, %v1462_v58  ;;  %v1511_v19 = vadd.f32 %v1510_v10, %v484_v59  ;;  %v1517_v20 = vadd.f32 %v1516_v11, %v485_v60  ;;  %1133 = vrot.lane.b32.xlu0 %v2806_v3, %s2750_s23 }
  0xb0   : > { %2625 = vst.msk [vmem:[%s2852_s28 + $0x3] ss:$8 sm:$0x7] %vm2854_vm0, %v1445_v13  ;;  %v1470_v21 = vadd.f32 %v1469_v14, %v1468_v62  ;;  %v1555_v22 = vrot.slane %v522_v16, 4  ;;  %v514_v23 = vpop.permute.xlu1 %513  ;;  %v512_v24 = vpop.permute.xlu0 %511  ;;  %v1508_v31 = vrot.slane %v1507_v15, 1 }
  0xb1   : > { %v1474_v25 = vcombine.low %v1458_v17, %v1464_v18  ;;  %v1512_v26 = vrot.slane %v1511_v19, 2  ;;  %v1518_v27 = vrot.slane %v1517_v20, 2  ;;  %v517_v28 = vsel %vm515_vm6, %v510_v7, %v512_v24 }
  0xb2   : > { %v1488_v29 = vrot.slane %v1470_v21, %v2837_v30  ;;  %v1556_v32 = vadd.f32 %v1555_v22, %v522_v16  ;;  %v518_v33 = vsel %vm515_vm6, %v512_v24, %v514_v23  ;;  %1172 = vrot.lane.b32.xlu1 %v2806_v3, %s2751_s24  ;;  %v523_v37 = vmul.f32 %v517_v28, %v2823_v6 }
  0xb3   : > { %v1481_v34 = vrot.slane %v1474_v25, %v2837_v30  ;;  %v1513_v35 = vadd.f32 %v1512_v26, %v1511_v19  ;;  %v1519_v36 = vadd.f32 %v1518_v27, %v1517_v20  ;;  %1170 = vrot.lane.b32.xlu0 %v2798_v1, %s2751_s24  ;;  %v524_v40 = vmul.f32 %v518_v33, %v2817_v4  ;;  %v3033_v27 = vld [vmem:[%s2792_s16 + $0x18] sm:$0xff] }
  0xb4   : > { %v1557_v38 = vrot.slane %v1556_v32, 2  ;;  %v549_v41 = vpop.permute.xlu1 %548  ;;  %v547_v42 = vpop.permute.xlu0 %546  ;;  %v1561_v46 = vrot.slane %v523_v37, 4  ;;  %v1509_v47 = vadd.f32 %v1508_v31, %v1507_v15  ;;  %vm1100_vm6 = vcmask 384000  }
  0xb5   : > { %v1489_v43 = vcombine.low %v1481_v34, %v1488_v29  ;;  %v1514_v44 = vrot.slane %v1513_v35, 1  ;;  %v1520_v45 = vrot.slane %v1519_v36, 1  ;;  %v1567_v49 = vrot.slane %v524_v40, 4 }
  0xb6   : > { %v1558_v48 = vadd.f32 %v1557_v38, %v1556_v32  ;;  %v555_v50 = vsel %vm554_vm7, %v547_v42, %v549_v41  ;;  %1209 = vrot.lane.b32.xlu1 %v2798_v1, %s2752_s25  ;;  %v1562_v54 = vadd.f32 %v1561_v46, %v523_v37 }
  0xb7   : > { %v1496_v51 = vrot.slane %v1489_v43, %v2837_v30  ;;  %v1515_v52 = vadd.f32 %v1514_v44, %v1513_v35  ;;  %v1521_v53 = vadd.f32 %v1520_v45, %v1519_v36  ;;  %1174 = vrot.lane.b32.xlu0 %v2795_v0, %s2751_s24  ;;  %v1568_v55 = vadd.f32 %v1567_v49, %v524_v40 }
  0xb8   : > { %v561_v56 = vmul.f32 %v555_v50, %v2820_v5  ;;  %v553_v57 = vpop.permute.xlu1 %552  ;;  %v551_v58 = vpop.permute.xlu0 %550  ;;  %v1559_v60 = vrot.slane %v1558_v48, 1  ;;  %v1563_v1 = vrot.slane %v1562_v54, 2 }
  0xb9   : > { %2626 = vst.msk [vmem:[%s2852_s28 + $0x4] ss:$8 sm:$0x7] %vm2854_vm0, %v1496_v51  ;;  %v1525_v59 = vcombine.low %v1509_v47, %v1515_v52  ;;  %v556_v61 = vsel %vm554_vm7, %v549_v41, %v551_v58  ;;  %v1539_v62 = vrot.slane %v1521_v53, %v2837_v30  ;;  %v1569_v63 = vrot.slane %v1568_v55, 2 }
  0xba   : > { %v1606_v7 = vrot.slane %v561_v56, 4  ;;  %v557_v8 = vsel %vm554_vm7, %v551_v58, %v553_v57  ;;  %1213 = vrot.lane.b32.xlu1 %v2795_v0, %s2752_s25  ;;  %v1564_v10 = vadd.f32 %v1563_v1, %v1562_v54  ;;  %v562_v11 = vmul.f32 %v556_v61, %v2823_v6 }
  0xbb   : > { %v1532_v9 = vrot.slane %v1525_v59, %v2837_v30  ;;  %v563_v12 = vmul.f32 %v557_v8, %v2817_v4  ;;  %1211 = vrot.lane.b32.xlu0 %v2806_v3, %s2752_s25  ;;  %v1570_v13 = vadd.f32 %v1569_v63, %v1568_v55  ;;  %v1560_v0 = vadd.f32 %v1559_v60, %v1558_v48 }
  0xbc   : > { %v1607_v14 = vadd.f32 %v1606_v7, %v561_v56  ;;  %v588_v15 = vpop.permute.xlu1 %587  ;;  %v586_v16 = vpop.permute.xlu0 %585  ;;  %v1565_v18 = vrot.slane %v1564_v10, 1  ;;  %v1612_v19 = vrot.slane %v562_v11, 4  ;;  %vm1139_vm7 = vcmask 375808  }
  0xbd   : > { %v1540_v17 = vcombine.low %v1532_v9, %v1539_v62  ;;  %v1618_v20 = vrot.slane %v563_v12, 4  ;;  %v1571_v21 = vrot.slane %v1570_v13, 1  ;;  %v594_v23 = vsel %vm593_vm8, %v586_v16, %v588_v15 }
  0xbe   : > { %v1608_v22 = vrot.slane %v1607_v14, 2  ;;  %903 = vrot.lane.b32.xlu1 %v2803_v2, %s2744_s15  ;;  %v1566_v24 = vadd.f32 %v1565_v18, %v1564_v10  ;;  %v1613_v25 = vadd.f32 %v1612_v19, %v562_v11  ;;  %v600_v31 = vmul.f32 %v594_v23, %v2820_v5 }
  0xbf   : > { %v1547_v3 = vrot.slane %v1540_v17, %v2837_v30  ;;  %v1619_v26 = vadd.f32 %v1618_v20, %v563_v12  ;;  %864 = vrot.lane.b32.xlu0 %v2803_v2, %s2743_s14  ;;  %v1572_v28 = vadd.f32 %v1571_v21, %v1570_v13 }
  0xc0   : > { %v1609_v29 = vadd.f32 %v1608_v22, %v1607_v14  ;;  %v592_v32 = vpop.permute.xlu1 %591  ;;  %v590_v33 = vpop.permute.xlu0 %589  ;;  %v1576_v34 = vcombine.low %v1560_v0, %v1566_v24  ;;  %v1614_v35 = vrot.slane %v1613_v25, 2  ;;  %v1657_v40 = vrot.slane %v600_v31, 4 }
  0xc1   : > { %2627 = vst.msk [vmem:[%s2852_s28 + $0x5] ss:$8 sm:$0x7] %vm2854_vm0, %v1547_v3  ;;  %v1620_v36 = vrot.slane %v1619_v26, 2  ;;  %v595_v37 = vsel %vm593_vm8, %v588_v15, %v590_v33  ;;  %v1590_v38 = vrot.slane %v1572_v28, %v2837_v30  ;;  %v596_v41 = vsel %vm593_vm8, %v590_v33, %v592_v32 }
  0xc2   : > { %v1610_v2 = vrot.slane %v1609_v29, 1  ;;  %981 = vrot.lane.b32.xlu1 %v3033_v27, %s2746_s18  ;;  %v1583_v42 = vrot.slane %v1576_v34, %v2837_v30  ;;  %v1615_v43 = vadd.f32 %v1614_v35, %v1613_v25  ;;  %v601_v45 = vmul.f32 %v595_v37, %v2823_v6 }
  0xc3   : > { %v1621_v44 = vadd.f32 %v1620_v36, %v1619_v26  ;;  %942 = vrot.lane.b32.xlu0 %v3033_v27, %s2745_s17  ;;  %v1658_v46 = vadd.f32 %v1657_v40, %v600_v31  ;;  %v602_v47 = vmul.f32 %v596_v41, %v2817_v4  ;;  %vm1178_vm8 = vcmask 367616  }
  0xc4   : > { %v627_v48 = vpop.permute.xlu1 %626  ;;  %v625_v49 = vpop.permute.xlu0 %624  ;;  %v1591_v50 = vcombine.low %v1583_v42, %v1590_v38  ;;  %v1616_v51 = vrot.slane %v1615_v43, 1  ;;  %v1663_v53 = vrot.slane %v601_v45, 4  ;;  %v1611_v54 = vadd.f32 %v1610_v2, %v1609_v29 }
  0xc5   : > { %v1622_v52 = vrot.slane %v1621_v44, 1  ;;  %v1659_v55 = vrot.slane %v1658_v46, 2  ;;  %v1669_v56 = vrot.slane %v602_v47, 4  ;;  %v633_v57 = vsel %vm632_vm9, %v625_v49, %v627_v48 }
  0xc6   : > { %1059 = vrot.lane.b32.xlu1 %v3033_v27, %s2748_s20  ;;  %v1598_v58 = vrot.slane %v1591_v50, %v2837_v30  ;;  %v1617_v59 = vadd.f32 %v1616_v51, %v1615_v43  ;;  %v1664_v1 = vadd.f32 %v1663_v53, %v601_v45  ;;  %v639_v63 = vmul.f32 %v633_v57, %v2820_v5 }
  0xc7   : > { %v1623_v60 = vadd.f32 %v1622_v52, %v1621_v44  ;;  %1020 = vrot.lane.b32.xlu0 %v3033_v27, %s2747_s19  ;;  %v1660_v61 = vadd.f32 %v1659_v55, %v1658_v46  ;;  %v1670_v62 = vadd.f32 %v1669_v56, %v602_v47 }
  0xc8   : > { %v631_v7 = vpop.permute.xlu1 %630  ;;  %v629_v8 = vpop.permute.xlu0 %628  ;;  %2628 = vst.msk [vmem:[%s2852_s28 + $0x6] ss:$8 sm:$0x7] %vm2854_vm0, %v1598_v58  ;;  %v1627_v9 = vcombine.low %v1611_v54, %v1617_v59  ;;  %v1665_v11 = vrot.slane %v1664_v1, 2  ;;  %v1708_v15 = vrot.slane %v639_v63, 4 }
  0xc9   : > { %v1641_v10 = vrot.slane %v1623_v60, %v2837_v30  ;;  %v634_v12 = vsel %vm632_vm9, %v627_v48, %v629_v8  ;;  %v1661_v13 = vrot.slane %v1660_v61, 1  ;;  %v1671_v14 = vrot.slane %v1670_v62, 2 }
  0xca   : > { %v635_v16 = vsel %vm632_vm9, %v629_v8, %v631_v7  ;;  %1137 = vrot.lane.b32.xlu1 %v3033_v27, %s2750_s23  ;;  %v1634_v17 = vrot.slane %v1627_v9, %v2837_v30  ;;  %v1666_v18 = vadd.f32 %v1665_v11, %v1664_v1  ;;  %v640_v19 = vmul.f32 %v634_v12, %v2823_v6 }
  0xcb   : > { %v641_v20 = vmul.f32 %v635_v16, %v2817_v4  ;;  %1098 = vrot.lane.b32.xlu0 %v3033_v27, %s2749_s22  ;;  %v1672_v0 = vadd.f32 %v1671_v14, %v1670_v62  ;;  %v1709_v21 = vadd.f32 %v1708_v15, %v639_v63  ;;  %v1662_v28 = vadd.f32 %v1661_v13, %v1660_v61 }
  0xcc   : > { %v666_v22 = vpop.permute.xlu1 %665  ;;  %v664_v23 = vpop.permute.xlu0 %663  ;;  %v1642_v3 = vcombine.low %v1634_v17, %v1641_v10  ;;  %v1667_v24 = vrot.slane %v1666_v18, 1  ;;  %v1714_v25 = vrot.slane %v640_v19, 4  ;;  %vm1217_vm9 = vcmask 359424  }
  0xcd   : > { %v1720_v26 = vrot.slane %v641_v20, 4  ;;  %v1673_v29 = vrot.slane %v1672_v0, 1  ;;  %v1710_v31 = vrot.slane %v1709_v21, 2  ;;  %v672_v32 = vsel %vm671_vm10, %v664_v23, %v666_v22 }
  0xce   : > { %1215 = vrot.lane.b32.xlu1 %v3033_v27, %s2752_s25  ;;  %v1649_v33 = vrot.slane %v1642_v3, %v2837_v30  ;;  %v1668_v34 = vadd.f32 %v1667_v24, %v1666_v18  ;;  %v1715_v35 = vadd.f32 %v1714_v25, %v640_v19  ;;  %v678_v2 = vmul.f32 %v672_v32, %v2820_v5 }
  0xcf   : > { %v1721_v36 = vadd.f32 %v1720_v26, %v641_v20  ;;  %1176 = vrot.lane.b32.xlu0 %v3033_v27, %s2751_s24  ;;  %v1674_v37 = vadd.f32 %v1673_v29, %v1672_v0  ;;  %v1711_v38 = vadd.f32 %v1710_v31, %v1709_v21 }
  0xd0   : > { %v670_v40 = vpop.permute.xlu1 %669  ;;  %v668_v41 = vpop.permute.xlu0 %667  ;;  %2629 = vst.msk [vmem:[%s2852_s28 + $0x7] ss:$8 sm:$0x7] %vm2854_vm0, %v1649_v33  ;;  %v1678_v42 = vcombine.low %v1662_v28, %v1668_v34  ;;  %v1716_v43 = vrot.slane %v1715_v35, 2  ;;  %v1759_v48 = vrot.slane %v678_v2, 4 }
  0xd1   : > { %v1722_v44 = vrot.slane %v1721_v36, 2  ;;  %v673_v45 = vsel %vm671_vm10, %v666_v22, %v668_v41  ;;  %v1692_v46 = vrot.slane %v1674_v37, %v2837_v30  ;;  %v1712_v47 = vrot.slane %v1711_v38, 1 }
  0xd2   : > { %v674_v27 = vsel %vm671_vm10, %v668_v41, %v670_v40  ;;  %v1685_v49 = vrot.slane %v1678_v42, %v2837_v30  ;;  %v1717_v50 = vadd.f32 %v1716_v43, %v1715_v35  ;;  %v679_v52 = vmul.f32 %v673_v45, %v2823_v6  ;;  %v3100_v43 = vld [vmem:[%s2814_s21] sm:$0xff] }
  0xd3   : > { %v1723_v51 = vadd.f32 %v1722_v44, %v1721_v36  ;;  %v1760_v53 = vadd.f32 %v1759_v48, %v678_v2  ;;  %v680_v54 = vmul.f32 %v674_v27, %v2817_v4  ;;  %v1713_v1 = vadd.f32 %v1712_v47, %v1711_v38 }
  0xd4   : > { %v705_v55 = vpop.permute.xlu1 %704  ;;  %v703_v56 = vpop.permute.xlu0 %702  ;;  %v1693_v57 = vcombine.low %v1685_v49, %v1692_v46  ;;  %v1718_v58 = vrot.slane %v1717_v50, 1  ;;  %v1765_v60 = vrot.slane %v679_v52, 4 }
  0xd5   : > { %v1724_v59 = vrot.slane %v1723_v51, 1  ;;  %v1761_v61 = vrot.slane %v1760_v53, 2  ;;  %v1771_v62 = vrot.slane %v680_v54, 4  ;;  %v711_v63 = vsel %vm710_vm11, %v703_v56, %v705_v55 }
  0xd6   : > { %v1700_v7 = vrot.slane %v1693_v57, %v2837_v30  ;;  %v1719_v8 = vadd.f32 %v1718_v58, %v1717_v50  ;;  %v1766_v10 = vadd.f32 %v1765_v60, %v679_v52  ;;  %v717_v13 = vmul.f32 %v711_v63, %v2820_v5  ;;  %v3111_v57 = vld [vmem:[%s2814_s21 + $0x8] sm:$0xff]  ;;  %v3115_v60 = vld [vmem:[%s2814_s21 + $0x10] sm:$0xff] }
  0xd7   : > { %v1725_v9 = vadd.f32 %v1724_v59, %v1723_v51  ;;  %v1762_v11 = vadd.f32 %v1761_v61, %v1760_v53  ;;  %v1772_v12 = vadd.f32 %v1771_v62, %v680_v54 }
  0xd8   : > { %v709_v14 = vpop.permute.xlu1 %708  ;;  %v707_v15 = vpop.permute.xlu0 %706  ;;  %2630 = vst.msk [vmem:[%s2852_s28 + $0x18] ss:$8 sm:$0x7] %vm2854_vm0, %v1700_v7  ;;  %v1729_v16 = vcombine.low %v1713_v1, %v1719_v8  ;;  %v1767_v18 = vrot.slane %v1766_v10, 2  ;;  %v1810_v21 = vrot.slane %v717_v13, 4 }
  0xd9   : > { %v1743_v17 = vrot.slane %v1725_v9, %v2837_v30  ;;  %v712_v19 = vsel %vm710_vm11, %v705_v55, %v707_v15  ;;  %v1763_v20 = vrot.slane %v1762_v11, 1  ;;  %v1773_v0 = vrot.slane %v1772_v12, 2 }
  0xda   : > { %v713_v22 = vsel %vm710_vm11, %v707_v15, %v709_v14  ;;  %v1736_v23 = vrot.slane %v1729_v16, %v2837_v30  ;;  %v1768_v5 = vadd.f32 %v1767_v18, %v1766_v10  ;;  %v718_v3 = vmul.f32 %v712_v19, %v2823_v6 }
  0xdb   : > { %v719_v24 = vmul.f32 %v713_v22, %v2817_v4  ;;  %v1774_v25 = vadd.f32 %v1773_v0, %v1772_v12  ;;  %v1811_v26 = vadd.f32 %v1810_v21, %v717_v13  ;;  %v1764_v35 = vadd.f32 %v1763_v20, %v1762_v11 }
  0xdc   : > { %v744_v28 = vpop.permute.xlu1 %743  ;;  %v742_v29 = vpop.permute.xlu0 %741  ;;  %v1744_v31 = vcombine.low %v1736_v23, %v1743_v17  ;;  %v1769_v32 = vrot.slane %v1768_v5, 1  ;;  %v1816_v33 = vrot.slane %v718_v3, 4 }
  0xdd   : > { %v1822_v34 = vrot.slane %v719_v24, 4  ;;  %v1775_v36 = vrot.slane %v1774_v25, 1  ;;  %v1812_v37 = vrot.slane %v1811_v26, 2  ;;  %v750_v38 = vsel %vm749_vm12, %v742_v29, %v744_v28 }
  0xde   : > { %v1751_v2 = vrot.slane %v1744_v31, %v2837_v30  ;;  %v1770_v6 = vadd.f32 %v1769_v32, %v1768_v5  ;;  %v1817_v40 = vadd.f32 %v1816_v33, %v718_v3  ;;  %v756_v44 = vmul.f32 %v3100_v43, %v750_v38 }
  0xdf   : > { %v1823_v4 = vadd.f32 %v1822_v34, %v719_v24  ;;  %v1776_v41 = vadd.f32 %v1775_v36, %v1774_v25  ;;  %v1813_v42 = vadd.f32 %v1812_v37, %v1811_v26 }
  0xe0   : > { %v748_v45 = vpop.permute.xlu1 %747  ;;  %v746_v46 = vpop.permute.xlu0 %745  ;;  %2631 = vst.msk [vmem:[%s2852_s28 + $0x19] ss:$8 sm:$0x7] %vm2854_vm0, %v1751_v2  ;;  %v1780_v47 = vcombine.low %v1764_v35, %v1770_v6  ;;  %v1818_v48 = vrot.slane %v1817_v40, 2  ;;  %v1861_v52 = vrot.slane %v756_v44, 4 }
  0xe1   : > { %v1824_v27 = vrot.slane %v1823_v4, 2  ;;  %v751_v49 = vsel %vm749_vm12, %v744_v28, %v746_v46  ;;  %v1794_v50 = vrot.slane %v1776_v41, %v2837_v30  ;;  %v1814_v51 = vrot.slane %v1813_v42, 1 }
  0xe2   : > { %v752_v53 = vsel %vm749_vm12, %v746_v46, %v748_v45  ;;  %v1787_v54 = vrot.slane %v1780_v47, %v2837_v30  ;;  %v1819_v55 = vadd.f32 %v1818_v48, %v1817_v40  ;;  %v757_v58 = vmul.f32 %v3111_v57, %v751_v49 }
  0xe3   : > { %v1825_v56 = vadd.f32 %v1824_v27, %v1823_v4  ;;  %v1862_v59 = vadd.f32 %v1861_v52, %v756_v44  ;;  %v758_v1 = vmul.f32 %v3115_v60, %v752_v53  ;;  %v1815_v10 = vadd.f32 %v1814_v51, %v1813_v42 }
  0xe4   : > { %v783_v61 = vpop.permute.xlu1 %782  ;;  %v781_v62 = vpop.permute.xlu0 %780  ;;  %v1795_v63 = vcombine.low %v1787_v54, %v1794_v50  ;;  %v1820_v7 = vrot.slane %v1819_v55, 1  ;;  %v1867_v9 = vrot.slane %v757_v58, 4 }
  0xe5   : > { %v1826_v8 = vrot.slane %v1825_v56, 1  ;;  %v1863_v11 = vrot.slane %v1862_v59, 2  ;;  %v1873_v12 = vrot.slane %v758_v1, 4  ;;  %v789_v13 = vsel %vm788_vm13, %v781_v62, %v783_v61 }
  0xe6   : > { %v1802_v14 = vrot.slane %v1795_v63, %v2837_v30  ;;  %v1821_v15 = vadd.f32 %v1820_v7, %v1819_v55  ;;  %v1868_v17 = vadd.f32 %v1867_v9, %v757_v58  ;;  %v795_v20 = vmul.f32 %v3100_v43, %v789_v13 }
  0xe7   : > { %v1827_v16 = vadd.f32 %v1826_v8, %v1825_v56  ;;  %v1864_v18 = vadd.f32 %v1863_v11, %v1862_v59  ;;  %v1874_v19 = vadd.f32 %v1873_v12, %v758_v1 }
  0xe8   : > { %v787_v0 = vpop.permute.xlu1 %786  ;;  %v785_v21 = vpop.permute.xlu0 %784  ;;  %2632 = vst.msk [vmem:[%s2852_s28 + $0x1a] ss:$8 sm:$0x7] %vm2854_vm0, %v1802_v14  ;;  %v1831_v22 = vcombine.low %v1815_v10, %v1821_v15  ;;  %v1869_v5 = vrot.slane %v1868_v17, 2  ;;  %v1912_v26 = vrot.slane %v795_v20, 4 }
  0xe9   : > { %v1845_v23 = vrot.slane %v1827_v16, %v2837_v30  ;;  %v790_v3 = vsel %vm788_vm13, %v783_v61, %v785_v21  ;;  %v1865_v24 = vrot.slane %v1864_v18, 1  ;;  %v1875_v25 = vrot.slane %v1874_v19, 2 }
  0xea   : > { %v791_v28 = vsel %vm788_vm13, %v785_v21, %v787_v0  ;;  %v1838_v29 = vrot.slane %v1831_v22, %v2837_v30  ;;  %v1870_v31 = vadd.f32 %v1869_v5, %v1868_v17  ;;  %v796_v32 = vmul.f32 %v3111_v57, %v790_v3 }
  0xeb   : > { %v797_v33 = vmul.f32 %v3115_v60, %v791_v28  ;;  %v1876_v34 = vadd.f32 %v1875_v25, %v1874_v19  ;;  %v1913_v35 = vadd.f32 %v1912_v26, %v795_v20  ;;  %v1866_v4 = vadd.f32 %v1865_v24, %v1864_v18 }
  0xec   : > { %v822_v36 = vpop.permute.xlu1 %821  ;;  %v820_v37 = vpop.permute.xlu0 %819  ;;  %v1846_v38 = vcombine.low %v1838_v29, %v1845_v23  ;;  %v1871_v2 = vrot.slane %v1870_v31, 1  ;;  %v1918_v6 = vrot.slane %v796_v32, 4 }
  0xed   : > { %v1924_v40 = vrot.slane %v797_v33, 4  ;;  %v1877_v41 = vrot.slane %v1876_v34, 1  ;;  %v1914_v42 = vrot.slane %v1913_v35, 2  ;;  %v828_v44 = vsel %vm827_vm14, %v820_v37, %v822_v36 }
  0xee   : > { %v1853_v45 = vrot.slane %v1846_v38, %v2837_v30  ;;  %v1872_v46 = vadd.f32 %v1871_v2, %v1870_v31  ;;  %v1919_v47 = vadd.f32 %v1918_v6, %v796_v32  ;;  %v834_v50 = vmul.f32 %v3100_v43, %v828_v44 }
  0xef   : > { %v1925_v48 = vadd.f32 %v1924_v40, %v797_v33  ;;  %v1878_v27 = vadd.f32 %v1877_v41, %v1876_v34  ;;  %v1915_v49 = vadd.f32 %v1914_v42, %v1913_v35 }
  0xf0   : > { %v826_v51 = vpop.permute.xlu1 %825  ;;  %v824_v52 = vpop.permute.xlu0 %823  ;;  %2633 = vst.msk [vmem:[%s2852_s28 + $0x1b] ss:$8 sm:$0x7] %vm2854_vm0, %v1853_v45  ;;  %v1882_v53 = vcombine.low %v1866_v4, %v1872_v46  ;;  %v1920_v54 = vrot.slane %v1919_v47, 2  ;;  %v1963_v1 = vrot.slane %v834_v50, 4 }
  0xf1   : > { %v1926_v55 = vrot.slane %v1925_v48, 2  ;;  %v829_v56 = vsel %vm827_vm14, %v822_v36, %v824_v52  ;;  %v1896_v58 = vrot.slane %v1878_v27, %v2837_v30  ;;  %v1916_v59 = vrot.slane %v1915_v49, 1 }
  0xf2   : > { %v830_v61 = vsel %vm827_vm14, %v824_v52, %v826_v51  ;;  %v1889_v62 = vrot.slane %v1882_v53, %v2837_v30  ;;  %v1921_v63 = vadd.f32 %v1920_v54, %v1919_v47  ;;  %v835_v8 = vmul.f32 %v3111_v57, %v829_v56 }
  0xf3   : > { %v1927_v7 = vadd.f32 %v1926_v55, %v1925_v48  ;;  %v1964_v9 = vadd.f32 %v1963_v1, %v834_v50  ;;  %v836_v10 = vmul.f32 %v3115_v60, %v830_v61  ;;  %v1917_v17 = vadd.f32 %v1916_v59, %v1915_v49 }
  0xf4   : > { %v861_v11 = vpop.permute.xlu1 %860  ;;  %v859_v12 = vpop.permute.xlu0 %858  ;;  %v1897_v13 = vcombine.low %v1889_v62, %v1896_v58  ;;  %v1922_v14 = vrot.slane %v1921_v63, 1  ;;  %v1969_v16 = vrot.slane %v835_v8, 4 }
  0xf5   : > { %v1928_v15 = vrot.slane %v1927_v7, 1  ;;  %v1965_v18 = vrot.slane %v1964_v9, 2  ;;  %v1975_v19 = vrot.slane %v836_v10, 4  ;;  %v867_v47 = vsel %vm866_vm15, %v859_v12, %v861_v11 }
  0xf6   : > { %v1904_v20 = vrot.slane %v1897_v13, %v2837_v30  ;;  %v1923_v0 = vadd.f32 %v1922_v14, %v1921_v63  ;;  %v1970_v22 = vadd.f32 %v1969_v16, %v835_v8  ;;  %v873_v52 = vmul.f32 %v3100_v43, %v867_v47 }
  0xf7   : > { %v1929_v21 = vadd.f32 %v1928_v15, %v1927_v7  ;;  %v1966_v23 = vadd.f32 %v1965_v18, %v1964_v9  ;;  %v1976_v5 = vadd.f32 %v1975_v19, %v836_v10 }
  0xf8   : > { %v898_v3 = vpop.permute.xlu1 %897  ;;  %v3143_v24 = vpop.permute.xlu0 %862  ;;  %2634 = vst.msk [vmem:[%s2852_s28 + $0x1c] ss:$8 sm:$0x7] %vm2854_vm0, %v1904_v20  ;;  %v1933_v25 = vcombine.low %v1917_v17, %v1923_v0  ;;  %v1971_v26 = vrot.slane %v1970_v22, 2  ;;  %v2014_v59 = vrot.slane %v873_v52, 4 }
  0xf9   : > { %v1977_v28 = vrot.slane %v1976_v5, 2  ;;  %v1947_v31 = vrot.slane %v1929_v21, %v2837_v30  ;;  %v1967_v32 = vrot.slane %v1966_v23, 1  ;;  %v868_v41 = vsel %vm866_vm15, %v861_v11, %v3143_v24 }
  0xfa   : > { %v1940_v29 = vrot.slane %v1933_v25, %v2837_v30  ;;  %v1972_v33 = vadd.f32 %v1971_v26, %v1970_v22  ;;  %v874_v48 = vmul.f32 %v3111_v57, %v868_v41  ;;  %v2015_v11 = vadd.f32 %v2014_v59, %v873_v52 }
  0xfb   : > { %v1978_v34 = vadd.f32 %v1977_v28, %v1976_v5  ;;  %v1968_v40 = vadd.f32 %v1967_v32, %v1966_v23 }
  0xfc   : > { %v3150_v35 = vpop.permute.xlu1 %901  ;;  %v900_v36 = vpop.permute.xlu0 %899  ;;  %v1948_v37 = vcombine.low %v1940_v29, %v1947_v31  ;;  %v1973_v38 = vrot.slane %v1972_v33, 1  ;;  %v2020_v54 = vrot.slane %v874_v48, 4  ;;  %v2016_v22 = vrot.slane %v2015_v11, 2 }
  0xfd   : > { %v1979_v2 = vrot.slane %v1978_v34, 1  ;;  %v906_v55 = vsel %vm905_vm1, %v898_v3, %v900_v36  ;;  %v907_v63 = vsel %vm905_vm1, %v900_v36, %v3150_v35 }
  0xfe   : > { %v1955_v6 = vrot.slane %v1948_v37, %v2837_v30  ;;  %v1974_v4 = vadd.f32 %v1973_v38, %v1972_v33  ;;  %v912_v1 = vmul.f32 %v3100_v43, %v906_v55  ;;  %v2021_v62 = vadd.f32 %v2020_v54, %v874_v48 }
  0xff   : > { %v1980_v42 = vadd.f32 %v1979_v2, %v1978_v34  ;;  %v913_v12 = vmul.f32 %v3111_v57, %v907_v63  ;;  %v2017_v37 = vadd.f32 %v2016_v22, %v2015_v11 }
 0x100   : > { %v939_v44 = vpop.permute.xlu1 %938  ;;  %2635 = vst.msk [vmem:[%s2852_s28 + $0x1d] ss:$8 sm:$0x7] %vm2854_vm0, %v1955_v6  ;;  %v1984_v45 = vcombine.low %v1968_v40, %v1974_v4  ;;  %v2065_v13 = vrot.slane %v912_v1, 4  ;;  %v2022_v16 = vrot.slane %v2021_v62, 2 }
 0x101   : > { %v937_v46 = vpop.permute.xlu0 %936  ;;  %v1998_v49 = vrot.slane %v1980_v42, %v2837_v30  ;;  %v2071_v5 = vrot.slane %v913_v12, 4  ;;  %v2018_v52 = vrot.slane %v2017_v37, 1 }
 0x102   : > { %v1991_v27 = vrot.slane %v1984_v45, %v2837_v30  ;;  %v945_v8 = vsel %vm944_vm2, %v937_v46, %v939_v44  ;;  %v2066_v23 = vadd.f32 %v2065_v13, %v912_v1  ;;  %v2023_v25 = vadd.f32 %v2022_v16, %v2021_v62 }
 0x103   : > { %v951_v18 = vmul.f32 %v3100_v43, %v945_v8  ;;  %v2072_v2 = vadd.f32 %v2071_v5, %v913_v12 }
 0x104   : > { %v976_v50 = vpop.permute.xlu1 %975  ;;  %v1999_v51 = vcombine.low %v1991_v27, %v1998_v49  ;;  %v2067_v38 = vrot.slane %v2066_v23, 2 }
 0x105   : > { %v3163_v53 = vpop.permute.xlu0 %940  ;;  %v2116_v29 = vrot.slane %v951_v18, 4  ;;  %v2073_v55 = vrot.slane %v2072_v2, 2 }
 0x106   : > { %v2006_v56 = vrot.slane %v1999_v51, %v2837_v30  ;;  %v946_v7 = vsel %vm944_vm2, %v939_v44, %v3163_v53  ;;  %v2024_v44 = vrot.slane %v2023_v25, 1  ;;  %v2068_v54 = vadd.f32 %v2067_v38, %v2066_v23 }
 0x107   : > { %v952_v17 = vmul.f32 %v3111_v57, %v946_v7  ;;  %v2117_v45 = vadd.f32 %v2116_v29, %v951_v18  ;;  %v3206_v18 = vadd.f32 %v2018_v52, %v2017_v37 }
 0x108   : > { %v3167_v58 = vpop.permute.xlu1 %979  ;;  %2636 = vst.msk [vmem:[%s2852_s28 + $0x1e] ss:$8 sm:$0x7] %vm2854_vm0, %v2006_v56 }
 0x109   : > { %v978_v61 = vpop.permute.xlu0 %977  ;;  %v2122_v26 = vrot.slane %v952_v17, 4  ;;  %v2118_v63 = vrot.slane %v2117_v45, 2 }
 0x10a   : > { %v984_v9 = vsel %vm983_vm3, %v976_v50, %v978_v61  ;;  %v985_v14 = vsel %vm983_vm3, %v978_v61, %v3167_v58 }
 0x10b   : > { %v990_v19 = vmul.f32 %v3100_v43, %v984_v9  ;;  %v991_v20 = vmul.f32 %v3111_v57, %v985_v14  ;;  %v2123_v4 = vadd.f32 %v2122_v26, %v952_v17  ;;  %v3202_v9 = vadd.f32 %v2024_v44, %v2023_v25 }
 0x10c   : > { %v1017_v10 = vpop.permute.xlu1 %1016  ;;  %v2074_v14 = vadd.f32 %v2073_v55, %v2072_v2 }
 0x10d   : > { %v1015_v15 = vpop.permute.xlu0 %1014  ;;  %v2167_v31 = vrot.slane %v990_v19, 4  ;;  %v2173_v34 = vrot.slane %v991_v20, 4  ;;  %v2124_v59 = vrot.slane %v2123_v4, 2  ;;  %v2035_v25 = vcombine.low %v3206_v18, %v3202_v9 }
 0x10e   : > { %v1023_v0 = vsel %vm1022_vm4, %v1015_v15, %v1017_v10 }
 0x10f   : > { %v1029_v32 = vmul.f32 %v3100_v43, %v1023_v0  ;;  %v2168_v46 = vadd.f32 %v2167_v31, %v990_v19  ;;  %v2174_v48 = vadd.f32 %v2173_v34, %v991_v20  ;;  %v2069_v19 = vrot.slane %v2068_v54, 1 }
 0x110   : > { %v1054_v21 = vpop.permute.xlu1 %1053  ;;  %v2125_v20 = vadd.f32 %v2124_v59, %v2123_v4 }
 0x111   : > { %v3187_v3 = vpop.permute.xlu0 %1018  ;;  %v2218_v47 = vrot.slane %v1029_v32, 4  ;;  %v2175_v11 = vrot.slane %v2174_v48, 2  ;;  %v2070_v2 = vadd.f32 %v2069_v19, %v2068_v54 }
 0x112   : > { %v1024_v28 = vsel %vm1022_vm4, %v1017_v10, %v3187_v3  ;;  %v2169_v10 = vrot.slane %v2168_v46, 2 }
 0x113   : > { %v1030_v33 = vmul.f32 %v3111_v57, %v1024_v28  ;;  %v2219_v7 = vadd.f32 %v2218_v47, %v1029_v32  ;;  %v2176_v28 = vadd.f32 %v2175_v11, %v2174_v48  ;;  %v2075_v32 = vrot.slane %v2074_v14, 1 }
 0x114   : > { %v3193_v36 = vpop.permute.xlu1 %1057  ;;  %v2170_v26 = vadd.f32 %v2169_v10, %v2168_v46 }
 0x115   : > { %v2224_v6 = vrot.slane %v1030_v33, 4  ;;  %v1056_v40 = vpop.permute.xlu0 %1055  ;;  %v2220_v22 = vrot.slane %v2219_v7, 2  ;;  %v2177_v47 = vrot.slane %v2176_v28, 1 }
 0x116   : > { %v1062_v41 = vsel %vm1061_vm5, %v1054_v21, %v1056_v40  ;;  %v1063_v42 = vsel %vm1061_vm5, %v1056_v40, %v3193_v36  ;;  %v2119_v21 = vadd.f32 %v2118_v63, %v2117_v45  ;;  %v2171_v46 = vrot.slane %v2170_v26, 1 }
 0x117   : > { %v2225_v27 = vadd.f32 %v2224_v6, %v1030_v33  ;;  %v1068_v49 = vmul.f32 %v3100_v43, %v1062_v41  ;;  %v1069_v50 = vmul.f32 %v3111_v57, %v1063_v42  ;;  %v2126_v6 = vrot.slane %v2125_v20, 1 }
 0x118   : > { %v1095_v51 = vpop.permute.xlu1 %1094  ;;  %v2120_v41 = vrot.slane %v2119_v21, 1  ;;  %v2221_v42 = vadd.f32 %v2220_v22, %v2219_v7  ;;  %v2172_v10 = vadd.f32 %v2171_v46, %v2170_v26  ;;  %v2178_v11 = vadd.f32 %v2177_v47, %v2176_v28 }
 0x119   : > { %v1093_v56 = vpop.permute.xlu0 %1092  ;;  %v2269_v1 = vrot.slane %v1068_v49, 4  ;;  %v2275_v61 = vrot.slane %v1069_v50, 4  ;;  %v2226_v12 = vrot.slane %v2225_v27, 2  ;;  %v2127_v59 = vadd.f32 %v2126_v6, %v2125_v20 }
 0x11a   : > { %v1101_v62 = vsel %vm1100_vm6, %v1093_v56, %v1095_v51  ;;  %v2076_v56 = vadd.f32 %v2075_v32, %v2074_v14  ;;  %v2121_v9 = vadd.f32 %v2120_v41, %v2119_v21  ;;  %v3227_v26 = vrot.slane %v2035_v25, %v2837_v30 }
 0x11b   : > { %v1107_v8 = vmul.f32 %v3100_v43, %v1101_v62  ;;  %v2270_v15 = vadd.f32 %v2269_v1, %v1068_v49  ;;  %v2276_v16 = vadd.f32 %v2275_v61, %v1069_v50  ;;  %v2227_v29 = vadd.f32 %v2226_v12, %v2225_v27 }
 0x11c   : > { %v1132_v13 = vpop.permute.xlu1 %1131  ;;  %v2222_v62 = vrot.slane %v2221_v42, 1  ;;  %v2086_v14 = vcombine.low %v2070_v2, %v2076_v56  ;;  %v2137_v20 = vcombine.low %v2121_v9, %v2127_v59  ;;  %v2188_v28 = vcombine.low %v2172_v10, %v2178_v11 }
 0x11d   : > { %v3204_v17 = vpop.permute.xlu0 %1096  ;;  %v2320_v23 = vrot.slane %v1107_v8, 4  ;;  %v2271_v33 = vrot.slane %v2270_v15, 2  ;;  %v2277_v34 = vrot.slane %v2276_v16, 2  ;;  %v2228_v48 = vrot.slane %v2227_v29, 1 }
 0x11e   : > { %v1102_v0 = vsel %vm1100_vm6, %v1095_v51, %v3204_v17 }
 0x11f   : > { %v1108_v5 = vmul.f32 %v3111_v57, %v1102_v0  ;;  %v2321_v44 = vadd.f32 %v2320_v23, %v1107_v8  ;;  %v2272_v50 = vadd.f32 %v2271_v33, %v2270_v15  ;;  %v2278_v51 = vadd.f32 %v2277_v34, %v2276_v16 }
 0x120   : > { %v3213_v31 = vpop.permute.xlu1 %1135  ;;  %v2229_v15 = vadd.f32 %v2228_v48, %v2227_v29  ;;  %v3242_v48 = vrot.slane %v2188_v28, %v2837_v30 }
 0x121   : > { %v2326_v37 = vrot.slane %v1108_v5, 4  ;;  %v1134_v38 = vpop.permute.xlu0 %1133  ;;  %v2322_v63 = vrot.slane %v2321_v44, 2  ;;  %v2273_v16 = vrot.slane %v2272_v50, 1  ;;  %v2279_v18 = vrot.slane %v2278_v51, 1 }
 0x122   : > { %v1140_v40 = vsel %vm1139_vm7, %v1132_v13, %v1134_v38  ;;  %v1141_v4 = vsel %vm1139_vm7, %v1134_v38, %v3213_v31 }
 0x123   : > { %v1146_v45 = vmul.f32 %v3100_v43, %v1140_v40  ;;  %v1147_v27 = vmul.f32 %v3111_v57, %v1141_v4  ;;  %v2327_v52 = vadd.f32 %v2326_v37, %v1108_v5  ;;  %v2223_v5 = vadd.f32 %v2222_v62, %v2221_v42 }
 0x124   : > { %v1173_v49 = vpop.permute.xlu1 %1172  ;;  %v2323_v32 = vadd.f32 %v2322_v63, %v2321_v44  ;;  %v2274_v38 = vadd.f32 %v2273_v16, %v2272_v50  ;;  %v2280_v2 = vadd.f32 %v2279_v18, %v2278_v51  ;;  %v3233_v4 = vrot.slane %v2086_v14, %v2837_v30 }
 0x125   : > { %v2371_v54 = vrot.slane %v1146_v45, 4  ;;  %v1171_v55 = vpop.permute.xlu0 %1170  ;;  %v2377_v1 = vrot.slane %v1147_v27, 4  ;;  %v2328_v19 = vrot.slane %v2327_v52, 2  ;;  %v2239_v37 = vcombine.low %v2223_v5, %v2229_v15 }
 0x126   : > { %v1179_v61 = vsel %vm1178_vm8, %v1171_v55, %v1173_v49  ;;  %v3239_v44 = vrot.slane %v2137_v20, %v2837_v30 }
 0x127   : > { %v2372_v7 = vadd.f32 %v2371_v54, %v1146_v45  ;;  %v1185_v8 = vmul.f32 %v3100_v43, %v1179_v61  ;;  %v2378_v12 = vadd.f32 %v2377_v1, %v1147_v27  ;;  %v2329_v6 = vadd.f32 %v2328_v19, %v2327_v52 }
 0x128   : > { %v1210_v13 = vpop.permute.xlu1 %1209  ;;  %v2324_v45 = vrot.slane %v2323_v32, 1  ;;  %v3247_v52 = vrot.slane %v2239_v37, %v2837_v30  ;;  %v2290_v54 = vcombine.low %v2274_v38, %v2280_v2 }
 0x129   : > { %v3222_v0 = vpop.permute.xlu0 %1174  ;;  %v2422_v22 = vrot.slane %v1185_v8, 4  ;;  %v2373_v33 = vrot.slane %v2372_v7, 2  ;;  %v2379_v21 = vrot.slane %v2378_v12, 2  ;;  %v2330_v55 = vrot.slane %v2329_v6, 1 }
 0x12a   : > { %v1180_v23 = vsel %vm1178_vm8, %v1173_v49, %v3222_v0 }
 0x12b   : > { %v1186_v29 = vmul.f32 %v3111_v57, %v1180_v23  ;;  %v2423_v41 = vadd.f32 %v2422_v22, %v1185_v8  ;;  %v2374_v46 = vadd.f32 %v2373_v33, %v2372_v7  ;;  %v2380_v47 = vadd.f32 %v2379_v21, %v2378_v12 }
 0x12c   : > { %v3230_v34 = vpop.permute.xlu1 %1213  ;;  %v3252_v7 = vadd.f32 %v2324_v45, %v2323_v32  ;;  %v3259_v15 = vadd.f32 %v2330_v55, %v2329_v6 }
 0x12d   : > { %v1212_v40 = vpop.permute.xlu0 %1211  ;;  %v2428_v27 = vrot.slane %v1186_v29, 4  ;;  %v2424_v1 = vrot.slane %v2423_v41, 2  ;;  %v2381_v8 = vrot.slane %v2380_v47, 1 }
 0x12e   : > { %v1218_v42 = vsel %vm1217_vm9, %v1210_v13, %v1212_v40  ;;  %v1219_v25 = vsel %vm1217_vm9, %v1212_v40, %v3230_v34  ;;  %v2341_v38 = vcombine.low %v3252_v7, %v3259_v15 }
 0x12f   : > { %v1224_v49 = vmul.f32 %v3100_v43, %v1218_v42  ;;  %v1225_v50 = vmul.f32 %v3111_v57, %v1219_v25  ;;  %v2375_v43 = vrot.slane %v2374_v46, 1  ;;  %v2429_v9 = vadd.f32 %v2428_v27, %v1186_v29 }
 0x130   : > { %v904_v51 = vpop.permute.xlu1 %903  ;;  %v3264_v14 = vadd.f32 %v2424_v1, %v2423_v41  ;;  %v3269_v5 = vadd.f32 %v2381_v8, %v2380_v47 }
 0x131   : > { %v908_v56 = vsel %vm905_vm1, %v3150_v35, %v904_v51  ;;  %v865_v59 = vpop.permute.xlu0 %864  ;;  %v2473_v61 = vrot.slane %v1224_v49, 4  ;;  %v2479_v62 = vrot.slane %v1225_v50, 4  ;;  %v3257_v35 = vrot.slane %v2290_v54, %v2837_v30 }
 0x132   : > { %v914_v63 = vmul.f32 %v3115_v60, %v908_v56  ;;  %v869_v57 = vsel %vm866_vm15, %v3143_v24, %v865_v59  ;;  %v3267_v23 = vadd.f32 %v2375_v43, %v2374_v46  ;;  %v2430_v21 = vrot.slane %v2429_v9, 2 }
 0x133   : > { %v2474_v10 = vadd.f32 %v2473_v61, %v1224_v49  ;;  %v2480_v11 = vadd.f32 %v2479_v62, %v1225_v50  ;;  %v875_v16 = vmul.f32 %v3115_v60, %v869_v57  ;;  %v2426_v42 = vrot.slane %v3264_v14, 1 }
 0x134   : > { %v2077_v12 = vrot.slane %v914_v63, 4  ;;  %v982_v13 = vpop.permute.xlu1 %981  ;;  %v2392_v46 = vcombine.low %v3267_v23, %v3269_v5  ;;  %v3284_v50 = vadd.f32 %v2430_v21, %v2429_v9 }
 0x135   : > { %v986_v18 = vsel %vm983_vm3, %v3167_v58, %v982_v13  ;;  %v943_v19 = vpop.permute.xlu0 %942  ;;  %v2475_v20 = vrot.slane %v2474_v10, 2  ;;  %v2026_v32 = vrot.slane %v875_v16, 4  ;;  %v2481_v28 = vrot.slane %v2480_v11, 2 }
 0x136   : > { %v2078_v24 = vadd.f32 %v2077_v12, %v914_v63  ;;  %v992_v22 = vmul.f32 %v3115_v60, %v986_v18  ;;  %v947_v33 = vsel %vm944_vm2, %v3163_v53, %v943_v19  ;;  %v2427_v23 = vadd.f32 %v2426_v42, %v3264_v14 }
 0x137   : > { %v2027_v2 = vadd.f32 %v2026_v32, %v875_v16  ;;  %v953_v6 = vmul.f32 %v3115_v60, %v947_v33  ;;  %v3279_v25 = vadd.f32 %v2475_v20, %v2474_v10  ;;  %v3286_v51 = vadd.f32 %v2481_v28, %v2480_v11 }
 0x138   : > { %v2079_v29 = vrot.slane %v2078_v24, 2  ;;  %v2179_v37 = vrot.slane %v992_v22, 4  ;;  %v1060_v58 = vpop.permute.xlu1 %1059 }
 0x139   : > { %v1064_v40 = vsel %vm1061_vm5, %v3193_v36, %v1060_v58  ;;  %v1021_v41 = vpop.permute.xlu0 %1020  ;;  %v2028_v47 = vrot.slane %v2027_v2, 2  ;;  %v2128_v27 = vrot.slane %v953_v6, 4  ;;  %v2477_v62 = vrot.slane %v3279_v25, 1 }
 0x13a   : > { %v2080_v53 = vadd.f32 %v2079_v29, %v2078_v24  ;;  %v2180_v45 = vadd.f32 %v2179_v37, %v992_v22  ;;  %v1070_v49 = vmul.f32 %v3115_v60, %v1064_v40  ;;  %v1025_v61 = vsel %vm1022_vm4, %v3187_v3, %v1021_v41 }
 0x13b   : > { %v2029_v56 = vadd.f32 %v2028_v47, %v2027_v2  ;;  %v2129_v59 = vadd.f32 %v2128_v27, %v953_v6  ;;  %v1031_v8 = vmul.f32 %v3115_v60, %v1025_v61  ;;  %v2483_v13 = vrot.slane %v3286_v51, 1 }
 0x13c   : > { %v2081_v54 = vrot.slane %v2080_v53, 1  ;;  %v2181_v36 = vrot.slane %v2180_v45, 2  ;;  %v1138_v55 = vpop.permute.xlu1 %1137  ;;  %v2281_v1 = vrot.slane %v1070_v49, 4 }
 0x13d   : > { %v2030_v57 = vrot.slane %v2029_v56, 1  ;;  %v2130_v9 = vrot.slane %v2129_v59, 2  ;;  %v1142_v11 = vsel %vm1139_vm7, %v3213_v31, %v1138_v55  ;;  %v1099_v12 = vpop.permute.xlu0 %1098  ;;  %v2230_v19 = vrot.slane %v1031_v8, 4 }
 0x13e   : > { %v2082_v63 = vadd.f32 %v2081_v54, %v2080_v53  ;;  %v2182_v43 = vadd.f32 %v2181_v36, %v2180_v45  ;;  %v2282_v10 = vadd.f32 %v2281_v1, %v1070_v49  ;;  %v1148_v22 = vmul.f32 %v3115_v60, %v1142_v11 }
 0x13f   : > { %v2031_v3 = vadd.f32 %v2030_v57, %v2029_v56  ;;  %v2131_v20 = vadd.f32 %v2130_v9, %v2129_v59  ;;  %v2231_v21 = vadd.f32 %v2230_v19, %v1031_v8  ;;  %v1103_v31 = vsel %vm1100_vm6, %v3204_v17, %v1099_v12 }
 0x140   : > { %v2100_v16 = vrot.slane %v2082_v63, %v2837_v30  ;;  %v2183_v18 = vrot.slane %v2182_v43, 1  ;;  %v2283_v24 = vrot.slane %v2282_v10, 2  ;;  %v2383_v58 = vrot.slane %v1148_v22, 4  ;;  %v1216_v2 = vpop.permute.xlu1 %1215 }
 0x141   : > { %v2049_v28 = vrot.slane %v2031_v3, %v2837_v30  ;;  %v2132_v29 = vrot.slane %v2131_v20, 1  ;;  %v2232_v41 = vrot.slane %v2231_v21, 2  ;;  %v1109_v53 = vmul.f32 %v3115_v60, %v1103_v31  ;;  %v1177_v55 = vpop.permute.xlu0 %1176 }
 0x142   : > { %v2101_v32 = vcombine.low %v3233_v4, %v2100_v16  ;;  %v2184_v33 = vadd.f32 %v2183_v18, %v2182_v43  ;;  %v2284_v37 = vadd.f32 %v2283_v24, %v2282_v10  ;;  %v2384_v27 = vadd.f32 %v2383_v58, %v1148_v22 }
 0x143   : > { %v2050_v4 = vcombine.low %v3227_v26, %v2049_v28  ;;  %v2133_v45 = vadd.f32 %v2132_v29, %v2131_v20  ;;  %v2233_v49 = vadd.f32 %v2232_v41, %v2231_v21  ;;  %v2332_v54 = vrot.slane %v1109_v53, 4 }
 0x144   : > { %v2108_v6 = vrot.slane %v2101_v32, %v2837_v30  ;;  %v2202_v40 = vrot.slane %v2184_v33, %v2837_v30  ;;  %v2285_v47 = vrot.slane %v2284_v37, 1  ;;  %v1220_v36 = vsel %vm1217_vm9, %v3230_v34, %v1216_v2 }
 0x145   : > { %v2057_v56 = vrot.slane %v2050_v4, %v2837_v30  ;;  %v2151_v26 = vrot.slane %v2133_v45, %v2837_v30  ;;  %v2385_v1 = vrot.slane %v2384_v27, 2  ;;  %v2234_v63 = vrot.slane %v2233_v49, 1 }
 0x146   : > { %2638 = vst.msk [vmem:[%s2852_s28 + $0x30] ss:$8 sm:$0x7] %vm2854_vm0, %v2108_v6  ;;  %v2203_v17 = vcombine.low %v3242_v48, %v2202_v40  ;;  %v2286_v59 = vadd.f32 %v2285_v47, %v2284_v37  ;;  %v2333_v43 = vadd.f32 %v2332_v54, %v1109_v53  ;;  %v1226_v8 = vmul.f32 %v3115_v60, %v1220_v36 }
 0x147   : > { %2637 = vst.msk [vmem:[%s2852_s28 + $0x1f] ss:$8 sm:$0x7] %vm2854_vm0, %v2057_v56  ;;  %v2152_v48 = vcombine.low %v3239_v44, %v2151_v26  ;;  %v2386_v57 = vadd.f32 %v2385_v1, %v2384_v27  ;;  %v1181_v9 = vsel %vm1178_vm8, %v3222_v0, %v1177_v55  ;;  %v2235_v10 = vadd.f32 %v2234_v63, %v2233_v49 }
 0x148   : > { %v2210_v61 = vrot.slane %v2203_v17, %v2837_v30  ;;  %v2304_v34 = vrot.slane %v2286_v59, %v2837_v30  ;;  %v2334_v11 = vrot.slane %v2333_v43, 2  ;;  %v2485_v12 = vrot.slane %v1226_v8, 4 }
 0x149   : > { %v1187_v16 = vmul.f32 %v3115_v60, %v1181_v9  ;;  %v2432_v18 = vrot.slane %v3284_v50, 1  ;;  %v2159_v19 = vrot.slane %v2152_v48, %v2837_v30  ;;  %v2387_v3 = vrot.slane %v2386_v57, 1 }
 0x14a   : > { %2640 = vst.msk [vmem:[%s2852_s28 + $0x32] ss:$8 sm:$0x7] %vm2854_vm0, %v2210_v61  ;;  %v2305_v44 = vcombine.low %v3257_v35, %v2304_v34  ;;  %v2253_v20 = vrot.slane %v2235_v10, %v2837_v30  ;;  %v2335_v0 = vadd.f32 %v2334_v11, %v2333_v43  ;;  %v2486_v24 = vadd.f32 %v2485_v12, %v1226_v8 }
 0x14b   : > { %v2434_v22 = vrot.slane %v1187_v16, 4  ;;  %v2478_v32 = vadd.f32 %v2477_v62, %v3279_v25  ;;  %v2484_v33 = vadd.f32 %v2483_v13, %v3286_v51  ;;  %2639 = vst.msk [vmem:[%s2852_s28 + $0x31] ss:$8 sm:$0x7] %vm2854_vm0, %v2159_v19  ;;  %v2388_v21 = vadd.f32 %v2387_v3, %v2386_v57 }
 0x14c   : > { %v2312_v60 = vrot.slane %v2305_v44, %v2837_v30  ;;  %v2254_v35 = vcombine.low %v3247_v52, %v2253_v20  ;;  %v2336_v31 = vrot.slane %v2335_v0, 1  ;;  %v2487_v28 = vrot.slane %v2486_v24, 2 }
 0x14d   : > { %v2435_v29 = vadd.f32 %v2434_v22, %v1187_v16  ;;  %v2399_v37 = vrot.slane %v2392_v46, %v2837_v30  ;;  %v2433_v25 = vadd.f32 %v2432_v18, %v3284_v50  ;;  %v2406_v51 = vrot.slane %v2388_v21, %v2837_v30 }
 0x14e   : > { %2642 = vst.msk [vmem:[%s2852_s28 + $0x34] ss:$8 sm:$0x7] %vm2854_vm0, %v2312_v60  ;;  %v2261_v62 = vrot.slane %v2254_v35, %v2837_v30  ;;  %v2337_v13 = vadd.f32 %v2336_v31, %v2335_v0  ;;  %v2488_v52 = vadd.f32 %v2487_v28, %v2486_v24  ;;  %v2348_v2 = vrot.slane %v2341_v38, %v2837_v30 }
 0x14f   : > { %v2436_v58 = vrot.slane %v2435_v29, 2  ;;  %v2407_v5 = vcombine.low %v2399_v37, %v2406_v51  ;;  %v2494_v46 = vcombine.low %v2478_v32, %v2484_v33  ;;  %v2443_v53 = vcombine.low %v2427_v23, %v2433_v25 }
 0x150   : > { %2641 = vst.msk [vmem:[%s2852_s28 + $0x33] ss:$8 sm:$0x7] %vm2854_vm0, %v2261_v62  ;;  %v2355_v50 = vrot.slane %v2337_v13, %v2837_v30  ;;  %v2489_v6 = vrot.slane %v2488_v52, 1 }
 0x151   : > { %v2437_v40 = vadd.f32 %v2436_v58, %v2435_v29  ;;  %v2414_v41 = vrot.slane %v2407_v5, %v2837_v30  ;;  %v2501_v14 = vrot.slane %v2494_v46, %v2837_v30  ;;  %v2450_v47 = vrot.slane %v2443_v53, %v2837_v30 }
 0x152   : > { %v2356_v7 = vcombine.low %v2348_v2, %v2355_v50  ;;  %v2490_v15 = vadd.f32 %v2489_v6, %v2488_v52 }
 0x153   : > { %v2438_v38 = vrot.slane %v2437_v40, 1  ;;  %2644 = vst.msk [vmem:[%s2852_s28 + $0x36] ss:$8 sm:$0x7] %vm2854_vm0, %v2414_v41 }
 0x154   : > { %v2363_v42 = vrot.slane %v2356_v7, %v2837_v30  ;;  %v2508_v4 = vrot.slane %v2490_v15, %v2837_v30 }
 0x155   : > { %v2439_v45 = vadd.f32 %v2438_v38, %v2437_v40 }
 0x156   : > { %2643 = vst.msk [vmem:[%s2852_s28 + $0x35] ss:$8 sm:$0x7] %vm2854_vm0, %v2363_v42  ;;  %v2509_v27 = vcombine.low %v2501_v14, %v2508_v4 }
 0x157   : > { %v2457_v17 = vrot.slane %v2439_v45, %v2837_v30 }
 0x158   : > { %v2516_v49 = vrot.slane %v2509_v27, %v2837_v30 }
 0x159   : > { %v2458_v54 = vcombine.low %v2450_v47, %v2457_v17 }
 0x15a   : > { %2646 = vst.msk [vmem:[%s2852_s28 + $0x48] ss:$8 sm:$0x7] %vm2854_vm0, %v2516_v49 }
 0x15b   : > { %v2465_v36 = vrot.slane %v2458_v54, %v2837_v30 }
 0x15d   : > { %2645 = vst.msk [vmem:[%s2852_s28 + $0x37] ss:$8 sm:$0x7] %vm2854_vm0, %v2465_v36 }
 0x15e PF: > { %s12_s11 = sadd.s32 1, %s2726_s11   ;;  %s3394_s9 = smov %s2722_s10 }
 0x15f   : > { %p9_p5 = scmp.ge.s32.totalorder %s12_s11, 4   ;;  %s3395_s10 = smov %s3397_s12 }
 0x161   :  { %11 = sbr.rel (!%p9_p5) target bundleno = 2 (0x2), region = 117 }

</bundles_post_ra>
